<compile_context>
chip_gen: v7x
topology: tpu7x:2x2x1
jax: 0.10.0
libtpu: 0.0.40
codegen_flags: <defaults>
</compile_context>

<pallas_src>
import functools

import jax
import jax.numpy as jnp
from jax.experimental import pallas as pl
from jax.experimental.pallas import tpu as pltpu

EPS = 1e-5  # eps of both AdaptiveInstanceNorm2d and nn.InstanceNorm2d


def _fused_kernel(x_ref, wa_ref, w2_ref, g1_ref, bt1_ref, g2_ref, bt2_ref,
                  mask_ref, out_ref, y1pad_ref, *, c2, hh, ww, wp):
    """Whole AdainUpResBlock forward for one batch sample.

    x_ref    : (1, Cin, Hp*Wp + 2)  padded+flattened upsampled input (VMEM)
    wa_ref   : (3, 3, 2*c2, Cin)    stacked [conv1; residual-conv] tap matrices
    w2_ref   : (3, 3, c2, c2)       conv2 tap matrices
    g*/bt*   : (1, c2, 1)           per-sample AdaIN affine
    mask_ref : (1, hh*wp)           1.0 on the ww valid columns of each row
    out_ref  : (1, c2, hh*wp)       result in the padded-row-stride layout
    y1pad_ref: (c2, Hp*Wp + 2)      VMEM scratch: zero-padded y1 for conv #2
    """
    L = hh * wp                      # working slab length (padded-width rows)
    inv_npix = 1.0 / float(hh * ww)  # norm statistics use only valid pixels
    maskf = mask_ref[...]            # (1, L)

    def conv3x3(load_slab, w_ref):
        # 9 taps -> 9 MXU matmuls, 3 independent partial accumulators (ILP).
        parts = []
        for dy in range(3):
            acc = None
            for dx in range(3):
                xs = load_slab(dy * wp + dx)                     # (Cin, L)
                d = jnp.dot(w_ref[dy, dx], xs,
                            preferred_element_type=jnp.float32)  # (Cout, L)
                acc = d if acc is None else acc + d
            parts.append(acc)
        return parts[0] + parts[1] + parts[2]

    def inorm_relu(q, gamma=None, beta=None):
        # Vectorized masked instance norm over all channels at once.
        qm = q * maskf
        s1 = jnp.sum(qm, axis=-1, keepdims=True)        # (C, 1)
        s2 = jnp.sum(qm * qm, axis=-1, keepdims=True)   # (C, 1)
        mean = s1 * inv_npix
        var = s2 * inv_npix - mean * mean
        y = (q - mean) * jax.lax.rsqrt(var + EPS)
        if gamma is not None:
            y = y * gamma + beta
        return jnp.maximum(y, 0.0)

    # ---- stage 1: conv1 (AdaIN affine) + residual conv (plain IN), shared taps
    acc_a = conv3x3(lambda off: x_ref[0, :, pl.ds(off, L)], wa_ref)  # (2*c2, L)
    y1 = inorm_relu(acc_a[:c2], g1_ref[0], bt1_ref[0])
    resid = inorm_relu(acc_a[c2:])

    # ---- re-pad y1 (zero border) into VMEM scratch for conv #2
    y1pad_ref[...] = jnp.zeros_like(y1pad_ref)
    y1pad_ref[:, pl.ds(wp + 1, L)] = y1 * maskf   # masked cols land on the border

    # ---- stage 2: conv2 (AdaIN affine) + ReLU, then residual add
    acc2 = conv3x3(lambda off: y1pad_ref[:, pl.ds(off, L)], w2_ref)  # (c2, L)
    y2 = inorm_relu(acc2, g2_ref[0], bt2_ref[0])
    out_ref[0] = (y2 + resid).astype(out_ref.dtype)


def adain_up_resblock(x, p):
    """x: (N, C, H, W) float32. Returns (N, C//2, 2H, 2W) float32."""
    n, c, h0, w0 = x.shape
    c2 = c // 2
    hh, ww = 2 * h0, 2 * w0
    hp, wp = hh + 2, ww + 2
    L = hh * wp              # per-channel working slab (valid cols + 2 scratch)
    LT = hp * wp + 2         # flat padded input (+2 slack for the last taps)

    # nearest-2x upsample + zero pad + flatten: one fused XLA pass over the
    # (small) input; everything downstream stays in VMEM.
    xu = jnp.repeat(jnp.repeat(x, 2, axis=2), 2, axis=3)
    xpf = jnp.pad(xu, ((0, 0), (0, 0), (1, 1), (1, 1))).reshape(n, c, hp * wp)
    xpf = jnp.pad(xpf, ((0, 0), (0, 0), (0, 2)))                   # (n, c, LT)

    # Weights as per-tap matrices; conv1 and the residual conv stacked on Cout.
    # Conv biases are intentionally dropped (exact no-op under instance norm).
    wa = jnp.concatenate([p["w1"], p["wr"]], axis=0)               # (2*c2,c,3,3)
    wa = jnp.transpose(wa, (2, 3, 0, 1)).astype(jnp.float32)       # (3,3,2*c2,c)
    w2 = jnp.transpose(p["w2"], (2, 3, 0, 1)).astype(jnp.float32)  # (3,3,c2,c2)

    g1 = p["g1"].reshape(n, c2, 1).astype(jnp.float32)
    bt1 = p["bt1"].reshape(n, c2, 1).astype(jnp.float32)
    g2 = p["g2"].reshape(n, c2, 1).astype(jnp.float32)
    bt2 = p["bt2"].reshape(n, c2, 1).astype(jnp.float32)

    # validity mask: columns >= ww of each padded-stride row are scratch.
    maskf = ((jnp.arange(L, dtype=jnp.int32) % wp) < ww
             ).astype(jnp.float32).reshape(1, L)

    kernel = functools.partial(_fused_kernel, c2=c2, hh=hh, ww=ww, wp=wp)
    full = lambda shape: pl.BlockSpec(shape, lambda b: (0,) * len(shape))
    per_b = pl.BlockSpec((1, c2, 1), lambda b: (b, 0, 0))

    out_flat = pl.pallas_call(
        kernel,
        grid=(n,),
        in_specs=[pl.BlockSpec((1, c, LT), lambda b: (b, 0, 0)),
                  full((3, 3, 2 * c2, c)),
                  full((3, 3, c2, c2)),
                  per_b, per_b, per_b, per_b,
                  full((1, L))],
        out_specs=pl.BlockSpec((1, c2, L), lambda b: (b, 0, 0)),
        out_shape=jax.ShapeDtypeStruct((n, c2, L), jnp.float32),
        scratch_shapes=[pltpu.VMEM((c2, LT), jnp.float32)],
        compiler_params=pltpu.CompilerParams(
            dimension_semantics=("parallel",),
            vmem_limit_bytes=32 * 1024 * 1024),
    )(xpf, wa, w2, g1, bt1, g2, bt2, maskf)

    # drop the 2 scratch columns of each row (layout plumbing only).
    return out_flat.reshape(n, c2, hh, wp)[:, :, :, :ww]


# ----------------------- pure-JAX reference (for checking) -----------------------
def _ref_conv(x, w, b):
    y = jax.lax.conv_general_dilated(
        x, w, window_strides=(1, 1), padding=((1, 1), (1, 1)),
        dimension_numbers=("NCHW", "OIHW", "NCHW"),
        precision=jax.lax.Precision.HIGHEST)
    return y + b.reshape(1, -1, 1, 1)


def _ref_inorm(y, gamma=None, beta=None):
    m = jnp.mean(y, axis=(2, 3), keepdims=True)
    v = jnp.mean((y - m) ** 2, axis=(2, 3), keepdims=True)
    yn = (y - m) / jnp.sqrt(v + EPS)
    if gamma is not None:
        yn = yn * gamma[:, :, None, None] + beta[:, :, None, None]
    return yn


def reference_forward(x, p):
    xu = jnp.repeat(jnp.repeat(x, 2, axis=2), 2, axis=3)
    y1 = jax.nn.relu(_ref_inorm(_ref_conv(xu, p["w1"], p["b1"]), p["g1"], p["bt1"]))
    y2 = jax.nn.relu(_ref_inorm(_ref_conv(y1, p["w2"], p["b2"]), p["g2"], p["bt2"]))
    r = jax.nn.relu(_ref_inorm(_ref_conv(xu, p["wr"], p["br"])))
    return r + y2


if __name__ == "__main__":
    key = jax.random.PRNGKey(0)
    n, dim, h0, w0 = 2, 4, 16, 16        # output channels = dim // 2
    c2 = dim // 2
    ks = jax.random.split(key, 11)

    x = jax.random.normal(ks[0], (n, dim, h0, w0), jnp.float32)
    params = {
        "w1": 0.3 * jax.random.normal(ks[1], (c2, dim, 3, 3), jnp.float32),
        "b1": 0.1 * jax.random.normal(ks[2], (c2,), jnp.float32),
        "w2": 0.3 * jax.random.normal(ks[3], (c2, c2, 3, 3), jnp.float32),
        "b2": 0.1 * jax.random.normal(ks[4], (c2,), jnp.float32),
        "wr": 0.3 * jax.random.normal(ks[5], (c2, dim, 3, 3), jnp.float32),
        "br": 0.1 * jax.random.normal(ks[6], (c2,), jnp.float32),
        # AdaIN per-sample affine params (assigned externally in PyTorch).
        "g1": 1.0 + 0.2 * jax.random.normal(ks[7], (n, c2), jnp.float32),
        "bt1": 0.2 * jax.random.normal(ks[8], (n, c2), jnp.float32),
        "g2": 1.0 + 0.2 * jax.random.normal(ks[9], (n, c2), jnp.float32),
        "bt2": 0.2 * jax.random.normal(ks[10], (n, c2), jnp.float32),
    }

    fwd = jax.jit(adain_up_resblock)
    out = jax.block_until_ready(fwd(x, params))
    ref = jax.block_until_ready(reference_forward(x, params))

    assert out.shape == (n, c2, 2 * h0, 2 * w0), out.shape
    max_err = float(jnp.max(jnp.abs(out - ref)))
    assert bool(jnp.allclose(out, ref, atol=5e-4, rtol=5e-4)), max_err
    print("KERNEL_OK")
</pallas_src>

<mosaic_0001>
module attributes {stable_mosaic.version = 11 : i64} {
  func.func @_fused_kernel(%arg0: i32, %arg1: memref<1x4x1158xf32, #tpu.memory_space<vmem>>, %arg2: memref<3x3x4x4xf32, #tpu.memory_space<vmem>>, %arg3: memref<3x3x2x2xf32, #tpu.memory_space<vmem>>, %arg4: memref<1x2x1xf32, #tpu.memory_space<vmem>>, %arg5: memref<1x2x1xf32, #tpu.memory_space<vmem>>, %arg6: memref<1x2x1xf32, #tpu.memory_space<vmem>>, %arg7: memref<1x2x1xf32, #tpu.memory_space<vmem>>, %arg8: memref<1x1088xf32, #tpu.memory_space<vmem>>, %arg9: memref<1x2x1088xf32, #tpu.memory_space<vmem>>, %arg10: memref<2x1158xf32, #tpu.memory_space<vmem>>) attributes {dimension_semantics = [#tpu.dimension_semantics<parallel>], iteration_bounds = array<i64: 2>, scalar_prefetch = 0 : i64, scratch_operands = 1 : i64, tpu.core_type = #tpu.core_type<tc>, window_params = [{transform_indices = @transform_0, window_bounds = array<i64: 1, 4, 1158>}, {pipeline_mode = #tpu.pipeline_mode<synchronous>, transform_indices = @transform_1, window_bounds = array<i64: 3, 3, 4, 4>}, {pipeline_mode = #tpu.pipeline_mode<synchronous>, transform_indices = @transform_2, window_bounds = array<i64: 3, 3, 2, 2>}, {transform_indices = @transform_3, window_bounds = array<i64: 1, 2, 1>}, {transform_indices = @transform_4, window_bounds = array<i64: 1, 2, 1>}, {transform_indices = @transform_5, window_bounds = array<i64: 1, 2, 1>}, {transform_indices = @transform_6, window_bounds = array<i64: 1, 2, 1>}, {pipeline_mode = #tpu.pipeline_mode<synchronous>, transform_indices = @transform_7, window_bounds = array<i64: 1, 1088>}, {transform_indices = @transform_8, window_bounds = array<i64: 1, 2, 1088>}]} {
    %c0 = arith.constant 0 : index
    %c0_0 = arith.constant 0 : index
    %0 = vector.load %arg8[%c0, %c0_0] : memref<1x1088xf32, #tpu.memory_space<vmem>>, vector<1x1088xf32>
    %c0_1 = arith.constant 0 : index
    %c0_2 = arith.constant 0 : index
    %c0_3 = arith.constant 0 : index
    %1 = vector.load %arg1[%c0_1, %c0_2, %c0_3] : memref<1x4x1158xf32, #tpu.memory_space<vmem>>, vector<1x4x1088xf32>
    %2 = vector.shape_cast %1 : vector<1x4x1088xf32> to vector<4x1088xf32>
    %c0_4 = arith.constant 0 : index
    %c0_5 = arith.constant 0 : index
    %c0_6 = arith.constant 0 : index
    %c0_7 = arith.constant 0 : index
    %3 = vector.load %arg2[%c0_4, %c0_5, %c0_6, %c0_7] : memref<3x3x4x4xf32, #tpu.memory_space<vmem>>, vector<1x1x4x4xf32>
    %4 = vector.shape_cast %3 : vector<1x1x4x4xf32> to vector<4x4xf32>
    %cst = arith.constant dense<0.000000e+00> : vector<4x1088xf32>
    %5 = tpu.matmul %4, %2, %cst {dimension_numbers = #tpu.dot_dimension_numbers<[1], [0], [0], [1], [0, 0, 1, 1], [], []>} : vector<4x4xf32>, vector<4x1088xf32>, vector<4x1088xf32> -> vector<4x1088xf32>
    %c0_8 = arith.constant 0 : index
    %c0_9 = arith.constant 0 : index
    %c1 = arith.constant 1 : index
    %6 = vector.load %arg1[%c0_8, %c0_9, %c1] : memref<1x4x1158xf32, #tpu.memory_space<vmem>>, vector<1x4x1088xf32>
    %7 = vector.shape_cast %6 : vector<1x4x1088xf32> to vector<4x1088xf32>
    %c0_10 = arith.constant 0 : index
    %c1_11 = arith.constant 1 : index
    %c0_12 = arith.constant 0 : index
    %c0_13 = arith.constant 0 : index
    %8 = vector.load %arg2[%c0_10, %c1_11, %c0_12, %c0_13] : memref<3x3x4x4xf32, #tpu.memory_space<vmem>>, vector<1x1x4x4xf32>
    %9 = vector.shape_cast %8 : vector<1x1x4x4xf32> to vector<4x4xf32>
    %cst_14 = arith.constant dense<0.000000e+00> : vector<4x1088xf32>
    %10 = tpu.matmul %9, %7, %cst_14 {dimension_numbers = #tpu.dot_dimension_numbers<[1], [0], [0], [1], [0, 0, 1, 1], [], []>} : vector<4x4xf32>, vector<4x1088xf32>, vector<4x1088xf32> -> vector<4x1088xf32>
    %11 = arith.addf %5, %10 : vector<4x1088xf32>
    %c0_15 = arith.constant 0 : index
    %c0_16 = arith.constant 0 : index
    %c2 = arith.constant 2 : index
    %12 = vector.load %arg1[%c0_15, %c0_16, %c2] : memref<1x4x1158xf32, #tpu.memory_space<vmem>>, vector<1x4x1088xf32>
    %13 = vector.shape_cast %12 : vector<1x4x1088xf32> to vector<4x1088xf32>
    %c0_17 = arith.constant 0 : index
    %c2_18 = arith.constant 2 : index
    %c0_19 = arith.constant 0 : index
    %c0_20 = arith.constant 0 : index
    %14 = vector.load %arg2[%c0_17, %c2_18, %c0_19, %c0_20] : memref<3x3x4x4xf32, #tpu.memory_space<vmem>>, vector<1x1x4x4xf32>
    %15 = vector.shape_cast %14 : vector<1x1x4x4xf32> to vector<4x4xf32>
    %cst_21 = arith.constant dense<0.000000e+00> : vector<4x1088xf32>
    %16 = tpu.matmul %15, %13, %cst_21 {dimension_numbers = #tpu.dot_dimension_numbers<[1], [0], [0], [1], [0, 0, 1, 1], [], []>} : vector<4x4xf32>, vector<4x1088xf32>, vector<4x1088xf32> -> vector<4x1088xf32>
    %17 = arith.addf %11, %16 : vector<4x1088xf32>
    %c0_22 = arith.constant 0 : index
    %c0_23 = arith.constant 0 : index
    %c34 = arith.constant 34 : index
    %18 = vector.load %arg1[%c0_22, %c0_23, %c34] : memref<1x4x1158xf32, #tpu.memory_space<vmem>>, vector<1x4x1088xf32>
    %19 = vector.shape_cast %18 : vector<1x4x1088xf32> to vector<4x1088xf32>
    %c1_24 = arith.constant 1 : index
    %c0_25 = arith.constant 0 : index
    %c0_26 = arith.constant 0 : index
    %c0_27 = arith.constant 0 : index
    %20 = vector.load %arg2[%c1_24, %c0_25, %c0_26, %c0_27] : memref<3x3x4x4xf32, #tpu.memory_space<vmem>>, vector<1x1x4x4xf32>
    %21 = vector.shape_cast %20 : vector<1x1x4x4xf32> to vector<4x4xf32>
    %cst_28 = arith.constant dense<0.000000e+00> : vector<4x1088xf32>
    %22 = tpu.matmul %21, %19, %cst_28 {dimension_numbers = #tpu.dot_dimension_numbers<[1], [0], [0], [1], [0, 0, 1, 1], [], []>} : vector<4x4xf32>, vector<4x1088xf32>, vector<4x1088xf32> -> vector<4x1088xf32>
    %c0_29 = arith.constant 0 : index
    %c0_30 = arith.constant 0 : index
    %c35 = arith.constant 35 : index
    %23 = vector.load %arg1[%c0_29, %c0_30, %c35] : memref<1x4x1158xf32, #tpu.memory_space<vmem>>, vector<1x4x1088xf32>
    %24 = vector.shape_cast %23 : vector<1x4x1088xf32> to vector<4x1088xf32>
    %c1_31 = arith.constant 1 : index
    %c1_32 = arith.constant 1 : index
    %c0_33 = arith.constant 0 : index
    %c0_34 = arith.constant 0 : index
    %25 = vector.load %arg2[%c1_31, %c1_32, %c0_33, %c0_34] : memref<3x3x4x4xf32, #tpu.memory_space<vmem>>, vector<1x1x4x4xf32>
    %26 = vector.shape_cast %25 : vector<1x1x4x4xf32> to vector<4x4xf32>
    %cst_35 = arith.constant dense<0.000000e+00> : vector<4x1088xf32>
    %27 = tpu.matmul %26, %24, %cst_35 {dimension_numbers = #tpu.dot_dimension_numbers<[1], [0], [0], [1], [0, 0, 1, 1], [], []>} : vector<4x4xf32>, vector<4x1088xf32>, vector<4x1088xf32> -> vector<4x1088xf32>
    %28 = arith.addf %22, %27 : vector<4x1088xf32>
    %c0_36 = arith.constant 0 : index
    %c0_37 = arith.constant 0 : index
    %c36 = arith.constant 36 : index
    %29 = vector.load %arg1[%c0_36, %c0_37, %c36] : memref<1x4x1158xf32, #tpu.memory_space<vmem>>, vector<1x4x1088xf32>
    %30 = vector.shape_cast %29 : vector<1x4x1088xf32> to vector<4x1088xf32>
    %c1_38 = arith.constant 1 : index
    %c2_39 = arith.constant 2 : index
    %c0_40 = arith.constant 0 : index
    %c0_41 = arith.constant 0 : index
    %31 = vector.load %arg2[%c1_38, %c2_39, %c0_40, %c0_41] : memref<3x3x4x4xf32, #tpu.memory_space<vmem>>, vector<1x1x4x4xf32>
    %32 = vector.shape_cast %31 : vector<1x1x4x4xf32> to vector<4x4xf32>
    %cst_42 = arith.constant dense<0.000000e+00> : vector<4x1088xf32>
    %33 = tpu.matmul %32, %30, %cst_42 {dimension_numbers = #tpu.dot_dimension_numbers<[1], [0], [0], [1], [0, 0, 1, 1], [], []>} : vector<4x4xf32>, vector<4x1088xf32>, vector<4x1088xf32> -> vector<4x1088xf32>
    %34 = arith.addf %28, %33 : vector<4x1088xf32>
    %c0_43 = arith.constant 0 : index
    %c0_44 = arith.constant 0 : index
    %c68 = arith.constant 68 : index
    %35 = vector.load %arg1[%c0_43, %c0_44, %c68] : memref<1x4x1158xf32, #tpu.memory_space<vmem>>, vector<1x4x1088xf32>
    %36 = vector.shape_cast %35 : vector<1x4x1088xf32> to vector<4x1088xf32>
    %c2_45 = arith.constant 2 : index
    %c0_46 = arith.constant 0 : index
    %c0_47 = arith.constant 0 : index
    %c0_48 = arith.constant 0 : index
    %37 = vector.load %arg2[%c2_45, %c0_46, %c0_47, %c0_48] : memref<3x3x4x4xf32, #tpu.memory_space<vmem>>, vector<1x1x4x4xf32>
    %38 = vector.shape_cast %37 : vector<1x1x4x4xf32> to vector<4x4xf32>
    %cst_49 = arith.constant dense<0.000000e+00> : vector<4x1088xf32>
    %39 = tpu.matmul %38, %36, %cst_49 {dimension_numbers = #tpu.dot_dimension_numbers<[1], [0], [0], [1], [0, 0, 1, 1], [], []>} : vector<4x4xf32>, vector<4x1088xf32>, vector<4x1088xf32> -> vector<4x1088xf32>
    %c0_50 = arith.constant 0 : index
    %c0_51 = arith.constant 0 : index
    %c69 = arith.constant 69 : index
    %40 = vector.load %arg1[%c0_50, %c0_51, %c69] : memref<1x4x1158xf32, #tpu.memory_space<vmem>>, vector<1x4x1088xf32>
    %41 = vector.shape_cast %40 : vector<1x4x1088xf32> to vector<4x1088xf32>
    %c2_52 = arith.constant 2 : index
    %c1_53 = arith.constant 1 : index
    %c0_54 = arith.constant 0 : index
    %c0_55 = arith.constant 0 : index
    %42 = vector.load %arg2[%c2_52, %c1_53, %c0_54, %c0_55] : memref<3x3x4x4xf32, #tpu.memory_space<vmem>>, vector<1x1x4x4xf32>
    %43 = vector.shape_cast %42 : vector<1x1x4x4xf32> to vector<4x4xf32>
    %cst_56 = arith.constant dense<0.000000e+00> : vector<4x1088xf32>
    %44 = tpu.matmul %43, %41, %cst_56 {dimension_numbers = #tpu.dot_dimension_numbers<[1], [0], [0], [1], [0, 0, 1, 1], [], []>} : vector<4x4xf32>, vector<4x1088xf32>, vector<4x1088xf32> -> vector<4x1088xf32>
    %45 = arith.addf %39, %44 : vector<4x1088xf32>
    %c0_57 = arith.constant 0 : index
    %c0_58 = arith.constant 0 : index
    %c70 = arith.constant 70 : index
    %46 = vector.load %arg1[%c0_57, %c0_58, %c70] : memref<1x4x1158xf32, #tpu.memory_space<vmem>>, vector<1x4x1088xf32>
    %47 = vector.shape_cast %46 : vector<1x4x1088xf32> to vector<4x1088xf32>
    %c2_59 = arith.constant 2 : index
    %c2_60 = arith.constant 2 : index
    %c0_61 = arith.constant 0 : index
    %c0_62 = arith.constant 0 : index
    %48 = vector.load %arg2[%c2_59, %c2_60, %c0_61, %c0_62] : memref<3x3x4x4xf32, #tpu.memory_space<vmem>>, vector<1x1x4x4xf32>
    %49 = vector.shape_cast %48 : vector<1x1x4x4xf32> to vector<4x4xf32>
    %cst_63 = arith.constant dense<0.000000e+00> : vector<4x1088xf32>
    %50 = tpu.matmul %49, %47, %cst_63 {dimension_numbers = #tpu.dot_dimension_numbers<[1], [0], [0], [1], [0, 0, 1, 1], [], []>} : vector<4x4xf32>, vector<4x1088xf32>, vector<4x1088xf32> -> vector<4x1088xf32>
    %51 = arith.addf %45, %50 : vector<4x1088xf32>
    %52 = arith.addf %17, %34 : vector<4x1088xf32>
    %53 = arith.addf %52, %51 : vector<4x1088xf32>
    %54 = vector.extract_strided_slice %53 {offsets = [0, 0], sizes = [2, 1088], strides = [1, 1]} : vector<4x1088xf32> to vector<2x1088xf32>
    %c0_64 = arith.constant 0 : index
    %c0_65 = arith.constant 0 : index
    %c0_66 = arith.constant 0 : index
    %55 = vector.load %arg4[%c0_64, %c0_65, %c0_66] : memref<1x2x1xf32, #tpu.memory_space<vmem>>, vector<1x2x1xf32>
    %56 = vector.shape_cast %55 : vector<1x2x1xf32> to vector<2x1xf32>
    %c0_67 = arith.constant 0 : index
    %c0_68 = arith.constant 0 : index
    %c0_69 = arith.constant 0 : index
    %57 = vector.load %arg5[%c0_67, %c0_68, %c0_69] : memref<1x2x1xf32, #tpu.memory_space<vmem>>, vector<1x2x1xf32>
    %58 = vector.shape_cast %57 : vector<1x2x1xf32> to vector<2x1xf32>
    %59 = vector.broadcast %0 : vector<1x1088xf32> to vector<2x1088xf32>
    %60 = arith.mulf %54, %59 : vector<2x1088xf32>
    %cst_70 = arith.constant dense<0.000000e+00> : vector<2xf32>
    %61 = vector.multi_reduction <add>, %60, %cst_70 [1] : vector<2x1088xf32> to vector<2xf32>
    %62 = vector.shape_cast %61 : vector<2xf32> to vector<2x1xf32>
    %63 = arith.mulf %60, %60 : vector<2x1088xf32>
    %cst_71 = arith.constant dense<0.000000e+00> : vector<2xf32>
    %64 = vector.multi_reduction <add>, %63, %cst_71 [1] : vector<2x1088xf32> to vector<2xf32>
    %65 = vector.shape_cast %64 : vector<2xf32> to vector<2x1xf32>
    %cst_72 = arith.constant 9.765625E-4 : f32
    %66 = vector.broadcast %cst_72 : f32 to vector<2x1xf32>
    %67 = arith.mulf %62, %66 : vector<2x1xf32>
    %cst_73 = arith.constant 9.765625E-4 : f32
    %68 = vector.broadcast %cst_73 : f32 to vector<2x1xf32>
    %69 = arith.mulf %65, %68 : vector<2x1xf32>
    %70 = arith.mulf %67, %67 : vector<2x1xf32>
    %71 = arith.subf %69, %70 : vector<2x1xf32>
    %72 = vector.broadcast %67 : vector<2x1xf32> to vector<2x1088xf32>
    %73 = arith.subf %54, %72 : vector<2x1088xf32>
    %cst_74 = arith.constant 9.99999974E-6 : f32
    %74 = vector.broadcast %cst_74 : f32 to vector<2x1xf32>
    %75 = arith.addf %71, %74 : vector<2x1xf32>
    %76 = math.rsqrt %75 : vector<2x1xf32>
    %77 = vector.broadcast %76 : vector<2x1xf32> to vector<2x1088xf32>
    %78 = arith.mulf %73, %77 : vector<2x1088xf32>
    %79 = vector.broadcast %56 : vector<2x1xf32> to vector<2x1088xf32>
    %80 = arith.mulf %78, %79 : vector<2x1088xf32>
    %81 = vector.broadcast %58 : vector<2x1xf32> to vector<2x1088xf32>
    %82 = arith.addf %80, %81 : vector<2x1088xf32>
    %cst_75 = arith.constant 0.000000e+00 : f32
    %83 = vector.broadcast %cst_75 : f32 to vector<2x1088xf32>
    %84 = arith.maximumf %82, %83 : vector<2x1088xf32>
    %85 = vector.extract_strided_slice %53 {offsets = [2, 0], sizes = [2, 1088], strides = [1, 1]} : vector<4x1088xf32> to vector<2x1088xf32>
    %86 = vector.broadcast %0 : vector<1x1088xf32> to vector<2x1088xf32>
    %87 = arith.mulf %85, %86 : vector<2x1088xf32>
    %cst_76 = arith.constant dense<0.000000e+00> : vector<2xf32>
    %88 = vector.multi_reduction <add>, %87, %cst_76 [1] : vector<2x1088xf32> to vector<2xf32>
    %89 = vector.shape_cast %88 : vector<2xf32> to vector<2x1xf32>
    %90 = arith.mulf %87, %87 : vector<2x1088xf32>
    %cst_77 = arith.constant dense<0.000000e+00> : vector<2xf32>
    %91 = vector.multi_reduction <add>, %90, %cst_77 [1] : vector<2x1088xf32> to vector<2xf32>
    %92 = vector.shape_cast %91 : vector<2xf32> to vector<2x1xf32>
    %cst_78 = arith.constant 9.765625E-4 : f32
    %93 = vector.broadcast %cst_78 : f32 to vector<2x1xf32>
    %94 = arith.mulf %89, %93 : vector<2x1xf32>
    %cst_79 = arith.constant 9.765625E-4 : f32
    %95 = vector.broadcast %cst_79 : f32 to vector<2x1xf32>
    %96 = arith.mulf %92, %95 : vector<2x1xf32>
    %97 = arith.mulf %94, %94 : vector<2x1xf32>
    %98 = arith.subf %96, %97 : vector<2x1xf32>
    %99 = vector.broadcast %94 : vector<2x1xf32> to vector<2x1088xf32>
    %100 = arith.subf %85, %99 : vector<2x1088xf32>
    %cst_80 = arith.constant 9.99999974E-6 : f32
    %101 = vector.broadcast %cst_80 : f32 to vector<2x1xf32>
    %102 = arith.addf %98, %101 : vector<2x1xf32>
    %103 = math.rsqrt %102 : vector<2x1xf32>
    %104 = vector.broadcast %103 : vector<2x1xf32> to vector<2x1088xf32>
    %105 = arith.mulf %100, %104 : vector<2x1088xf32>
    %cst_81 = arith.constant 0.000000e+00 : f32
    %106 = vector.broadcast %cst_81 : f32 to vector<2x1088xf32>
    %107 = arith.maximumf %105, %106 : vector<2x1088xf32>
    %cst_82 = arith.constant 0.000000e+00 : f32
    %108 = vector.broadcast %cst_82 : f32 to vector<2x1158xf32>
    %c0_83 = arith.constant 0 : index
    %c0_84 = arith.constant 0 : index
    %109 = vector.load %arg10[%c0_83, %c0_84] : memref<2x1158xf32, #tpu.memory_space<vmem>>, vector<2x1158xf32>
    tpu.vector_store %arg10[%c0_83, %c0_84], %108 {strides = array<i32>} : memref<2x1158xf32, #tpu.memory_space<vmem>>, vector<2x1158xf32>,
    %110 = vector.broadcast %0 : vector<1x1088xf32> to vector<2x1088xf32>
    %111 = arith.mulf %84, %110 : vector<2x1088xf32>
    %c0_85 = arith.constant 0 : index
    %c35_86 = arith.constant 35 : index
    %112 = vector.load %arg10[%c0_85, %c35_86] : memref<2x1158xf32, #tpu.memory_space<vmem>>, vector<2x1088xf32>
    tpu.vector_store %arg10[%c0_85, %c35_86], %111 {strides = array<i32>} : memref<2x1158xf32, #tpu.memory_space<vmem>>, vector<2x1088xf32>,
    %c0_87 = arith.constant 0 : index
    %c0_88 = arith.constant 0 : index
    %113 = vector.load %arg10[%c0_87, %c0_88] : memref<2x1158xf32, #tpu.memory_space<vmem>>, vector<2x1088xf32>
    %c0_89 = arith.constant 0 : index
    %c0_90 = arith.constant 0 : index
    %c0_91 = arith.constant 0 : index
    %c0_92 = arith.constant 0 : index
    %114 = vector.load %arg3[%c0_89, %c0_90, %c0_91, %c0_92] : memref<3x3x2x2xf32, #tpu.memory_space<vmem>>, vector<1x1x2x2xf32>
    %115 = vector.shape_cast %114 : vector<1x1x2x2xf32> to vector<2x2xf32>
    %cst_93 = arith.constant dense<0.000000e+00> : vector<2x1088xf32>
    %116 = tpu.matmul %115, %113, %cst_93 {dimension_numbers = #tpu.dot_dimension_numbers<[1], [0], [0], [1], [0, 0, 1, 1], [], []>} : vector<2x2xf32>, vector<2x1088xf32>, vector<2x1088xf32> -> vector<2x1088xf32>
    %c0_94 = arith.constant 0 : index
    %c1_95 = arith.constant 1 : index
    %117 = vector.load %arg10[%c0_94, %c1_95] : memref<2x1158xf32, #tpu.memory_space<vmem>>, vector<2x1088xf32>
    %c0_96 = arith.constant 0 : index
    %c1_97 = arith.constant 1 : index
    %c0_98 = arith.constant 0 : index
    %c0_99 = arith.constant 0 : index
    %118 = vector.load %arg3[%c0_96, %c1_97, %c0_98, %c0_99] : memref<3x3x2x2xf32, #tpu.memory_space<vmem>>, vector<1x1x2x2xf32>
    %119 = vector.shape_cast %118 : vector<1x1x2x2xf32> to vector<2x2xf32>
    %cst_100 = arith.constant dense<0.000000e+00> : vector<2x1088xf32>
    %120 = tpu.matmul %119, %117, %cst_100 {dimension_numbers = #tpu.dot_dimension_numbers<[1], [0], [0], [1], [0, 0, 1, 1], [], []>} : vector<2x2xf32>, vector<2x1088xf32>, vector<2x1088xf32> -> vector<2x1088xf32>
    %121 = arith.addf %116, %120 : vector<2x1088xf32>
    %c0_101 = arith.constant 0 : index
    %c2_102 = arith.constant 2 : index
    %122 = vector.load %arg10[%c0_101, %c2_102] : memref<2x1158xf32, #tpu.memory_space<vmem>>, vector<2x1088xf32>
    %c0_103 = arith.constant 0 : index
    %c2_104 = arith.constant 2 : index
    %c0_105 = arith.constant 0 : index
    %c0_106 = arith.constant 0 : index
    %123 = vector.load %arg3[%c0_103, %c2_104, %c0_105, %c0_106] : memref<3x3x2x2xf32, #tpu.memory_space<vmem>>, vector<1x1x2x2xf32>
    %124 = vector.shape_cast %123 : vector<1x1x2x2xf32> to vector<2x2xf32>
    %cst_107 = arith.constant dense<0.000000e+00> : vector<2x1088xf32>
    %125 = tpu.matmul %124, %122, %cst_107 {dimension_numbers = #tpu.dot_dimension_numbers<[1], [0], [0], [1], [0, 0, 1, 1], [], []>} : vector<2x2xf32>, vector<2x1088xf32>, vector<2x1088xf32> -> vector<2x1088xf32>
    %126 = arith.addf %121, %125 : vector<2x1088xf32>
    %c0_108 = arith.constant 0 : index
    %c34_109 = arith.constant 34 : index
    %127 = vector.load %arg10[%c0_108, %c34_109] : memref<2x1158xf32, #tpu.memory_space<vmem>>, vector<2x1088xf32>
    %c1_110 = arith.constant 1 : index
    %c0_111 = arith.constant 0 : index
    %c0_112 = arith.constant 0 : index
    %c0_113 = arith.constant 0 : index
    %128 = vector.load %arg3[%c1_110, %c0_111, %c0_112, %c0_113] : memref<3x3x2x2xf32, #tpu.memory_space<vmem>>, vector<1x1x2x2xf32>
    %129 = vector.shape_cast %128 : vector<1x1x2x2xf32> to vector<2x2xf32>
    %cst_114 = arith.constant dense<0.000000e+00> : vector<2x1088xf32>
    %130 = tpu.matmul %129, %127, %cst_114 {dimension_numbers = #tpu.dot_dimension_numbers<[1], [0], [0], [1], [0, 0, 1, 1], [], []>} : vector<2x2xf32>, vector<2x1088xf32>, vector<2x1088xf32> -> vector<2x1088xf32>
    %c0_115 = arith.constant 0 : index
    %c35_116 = arith.constant 35 : index
    %131 = vector.load %arg10[%c0_115, %c35_116] : memref<2x1158xf32, #tpu.memory_space<vmem>>, vector<2x1088xf32>
    %c1_117 = arith.constant 1 : index
    %c1_118 = arith.constant 1 : index
    %c0_119 = arith.constant 0 : index
    %c0_120 = arith.constant 0 : index
    %132 = vector.load %arg3[%c1_117, %c1_118, %c0_119, %c0_120] : memref<3x3x2x2xf32, #tpu.memory_space<vmem>>, vector<1x1x2x2xf32>
    %133 = vector.shape_cast %132 : vector<1x1x2x2xf32> to vector<2x2xf32>
    %cst_121 = arith.constant dense<0.000000e+00> : vector<2x1088xf32>
    %134 = tpu.matmul %133, %131, %cst_121 {dimension_numbers = #tpu.dot_dimension_numbers<[1], [0], [0], [1], [0, 0, 1, 1], [], []>} : vector<2x2xf32>, vector<2x1088xf32>, vector<2x1088xf32> -> vector<2x1088xf32>
    %135 = arith.addf %130, %134 : vector<2x1088xf32>
    %c0_122 = arith.constant 0 : index
    %c36_123 = arith.constant 36 : index
    %136 = vector.load %arg10[%c0_122, %c36_123] : memref<2x1158xf32, #tpu.memory_space<vmem>>, vector<2x1088xf32>
    %c1_124 = arith.constant 1 : index
    %c2_125 = arith.constant 2 : index
    %c0_126 = arith.constant 0 : index
    %c0_127 = arith.constant 0 : index
    %137 = vector.load %arg3[%c1_124, %c2_125, %c0_126, %c0_127] : memref<3x3x2x2xf32, #tpu.memory_space<vmem>>, vector<1x1x2x2xf32>
    %138 = vector.shape_cast %137 : vector<1x1x2x2xf32> to vector<2x2xf32>
    %cst_128 = arith.constant dense<0.000000e+00> : vector<2x1088xf32>
    %139 = tpu.matmul %138, %136, %cst_128 {dimension_numbers = #tpu.dot_dimension_numbers<[1], [0], [0], [1], [0, 0, 1, 1], [], []>} : vector<2x2xf32>, vector<2x1088xf32>, vector<2x1088xf32> -> vector<2x1088xf32>
    %140 = arith.addf %135, %139 : vector<2x1088xf32>
    %c0_129 = arith.constant 0 : index
    %c68_130 = arith.constant 68 : index
    %141 = vector.load %arg10[%c0_129, %c68_130] : memref<2x1158xf32, #tpu.memory_space<vmem>>, vector<2x1088xf32>
    %c2_131 = arith.constant 2 : index
    %c0_132 = arith.constant 0 : index
    %c0_133 = arith.constant 0 : index
    %c0_134 = arith.constant 0 : index
    %142 = vector.load %arg3[%c2_131, %c0_132, %c0_133, %c0_134] : memref<3x3x2x2xf32, #tpu.memory_space<vmem>>, vector<1x1x2x2xf32>
    %143 = vector.shape_cast %142 : vector<1x1x2x2xf32> to vector<2x2xf32>
    %cst_135 = arith.constant dense<0.000000e+00> : vector<2x1088xf32>
    %144 = tpu.matmul %143, %141, %cst_135 {dimension_numbers = #tpu.dot_dimension_numbers<[1], [0], [0], [1], [0, 0, 1, 1], [], []>} : vector<2x2xf32>, vector<2x1088xf32>, vector<2x1088xf32> -> vector<2x1088xf32>
    %c0_136 = arith.constant 0 : index
    %c69_137 = arith.constant 69 : index
    %145 = vector.load %arg10[%c0_136, %c69_137] : memref<2x1158xf32, #tpu.memory_space<vmem>>, vector<2x1088xf32>
    %c2_138 = arith.constant 2 : index
    %c1_139 = arith.constant 1 : index
    %c0_140 = arith.constant 0 : index
    %c0_141 = arith.constant 0 : index
    %146 = vector.load %arg3[%c2_138, %c1_139, %c0_140, %c0_141] : memref<3x3x2x2xf32, #tpu.memory_space<vmem>>, vector<1x1x2x2xf32>
    %147 = vector.shape_cast %146 : vector<1x1x2x2xf32> to vector<2x2xf32>
    %cst_142 = arith.constant dense<0.000000e+00> : vector<2x1088xf32>
    %148 = tpu.matmul %147, %145, %cst_142 {dimension_numbers = #tpu.dot_dimension_numbers<[1], [0], [0], [1], [0, 0, 1, 1], [], []>} : vector<2x2xf32>, vector<2x1088xf32>, vector<2x1088xf32> -> vector<2x1088xf32>
    %149 = arith.addf %144, %148 : vector<2x1088xf32>
    %c0_143 = arith.constant 0 : index
    %c70_144 = arith.constant 70 : index
    %150 = vector.load %arg10[%c0_143, %c70_144] : memref<2x1158xf32, #tpu.memory_space<vmem>>, vector<2x1088xf32>
    %c2_145 = arith.constant 2 : index
    %c2_146 = arith.constant 2 : index
    %c0_147 = arith.constant 0 : index
    %c0_148 = arith.constant 0 : index
    %151 = vector.load %arg3[%c2_145, %c2_146, %c0_147, %c0_148] : memref<3x3x2x2xf32, #tpu.memory_space<vmem>>, vector<1x1x2x2xf32>
    %152 = vector.shape_cast %151 : vector<1x1x2x2xf32> to vector<2x2xf32>
    %cst_149 = arith.constant dense<0.000000e+00> : vector<2x1088xf32>
    %153 = tpu.matmul %152, %150, %cst_149 {dimension_numbers = #tpu.dot_dimension_numbers<[1], [0], [0], [1], [0, 0, 1, 1], [], []>} : vector<2x2xf32>, vector<2x1088xf32>, vector<2x1088xf32> -> vector<2x1088xf32>
    %154 = arith.addf %149, %153 : vector<2x1088xf32>
    %155 = arith.addf %126, %140 : vector<2x1088xf32>
    %156 = arith.addf %155, %154 : vector<2x1088xf32>
    %c0_150 = arith.constant 0 : index
    %c0_151 = arith.constant 0 : index
    %c0_152 = arith.constant 0 : index
    %157 = vector.load %arg6[%c0_150, %c0_151, %c0_152] : memref<1x2x1xf32, #tpu.memory_space<vmem>>, vector<1x2x1xf32>
    %158 = vector.shape_cast %157 : vector<1x2x1xf32> to vector<2x1xf32>
    %c0_153 = arith.constant 0 : index
    %c0_154 = arith.constant 0 : index
    %c0_155 = arith.constant 0 : index
    %159 = vector.load %arg7[%c0_153, %c0_154, %c0_155] : memref<1x2x1xf32, #tpu.memory_space<vmem>>, vector<1x2x1xf32>
    %160 = vector.shape_cast %159 : vector<1x2x1xf32> to vector<2x1xf32>
    %161 = vector.broadcast %0 : vector<1x1088xf32> to vector<2x1088xf32>
    %162 = arith.mulf %156, %161 : vector<2x1088xf32>
    %cst_156 = arith.constant dense<0.000000e+00> : vector<2xf32>
    %163 = vector.multi_reduction <add>, %162, %cst_156 [1] : vector<2x1088xf32> to vector<2xf32>
    %164 = vector.shape_cast %163 : vector<2xf32> to vector<2x1xf32>
    %165 = arith.mulf %162, %162 : vector<2x1088xf32>
    %cst_157 = arith.constant dense<0.000000e+00> : vector<2xf32>
    %166 = vector.multi_reduction <add>, %165, %cst_157 [1] : vector<2x1088xf32> to vector<2xf32>
    %167 = vector.shape_cast %166 : vector<2xf32> to vector<2x1xf32>
    %cst_158 = arith.constant 9.765625E-4 : f32
    %168 = vector.broadcast %cst_158 : f32 to vector<2x1xf32>
    %169 = arith.mulf %164, %168 : vector<2x1xf32>
    %cst_159 = arith.constant 9.765625E-4 : f32
    %170 = vector.broadcast %cst_159 : f32 to vector<2x1xf32>
    %171 = arith.mulf %167, %170 : vector<2x1xf32>
    %172 = arith.mulf %169, %169 : vector<2x1xf32>
    %173 = arith.subf %171, %172 : vector<2x1xf32>
    %174 = vector.broadcast %169 : vector<2x1xf32> to vector<2x1088xf32>
    %175 = arith.subf %156, %174 : vector<2x1088xf32>
    %cst_160 = arith.constant 9.99999974E-6 : f32
    %176 = vector.broadcast %cst_160 : f32 to vector<2x1xf32>
    %177 = arith.addf %173, %176 : vector<2x1xf32>
    %178 = math.rsqrt %177 : vector<2x1xf32>
    %179 = vector.broadcast %178 : vector<2x1xf32> to vector<2x1088xf32>
    %180 = arith.mulf %175, %179 : vector<2x1088xf32>
    %181 = vector.broadcast %158 : vector<2x1xf32> to vector<2x1088xf32>
    %182 = arith.mulf %180, %181 : vector<2x1088xf32>
    %183 = vector.broadcast %160 : vector<2x1xf32> to vector<2x1088xf32>
    %184 = arith.addf %182, %183 : vector<2x1088xf32>
    %cst_161 = arith.constant 0.000000e+00 : f32
    %185 = vector.broadcast %cst_161 : f32 to vector<2x1088xf32>
    %186 = arith.maximumf %184, %185 : vector<2x1088xf32>
    %187 = arith.addf %186, %107 : vector<2x1088xf32>
    %c0_162 = arith.constant 0 : index
    %c0_163 = arith.constant 0 : index
    %c0_164 = arith.constant 0 : index
    %188 = vector.load %arg9[%c0_162, %c0_163, %c0_164] : memref<1x2x1088xf32, #tpu.memory_space<vmem>>, vector<1x2x1088xf32>
    %189 = vector.shape_cast %188 : vector<1x2x1088xf32> to vector<2x1088xf32>
    %190 = vector.shape_cast %187 : vector<2x1088xf32> to vector<1x2x1088xf32>
    tpu.vector_store %arg9[%c0_162, %c0_163, %c0_164], %190 {strides = array<i32>} : memref<1x2x1088xf32, #tpu.memory_space<vmem>>, vector<1x2x1088xf32>,
    return
  }
  func.func @transform_0(%arg0: i32) -> (i32, i32, i32) {
    %c0_i32 = arith.constant 0 : i32
    %c0_i32_0 = arith.constant 0 : i32
    %c0_i32_1 = arith.constant 0 : i32
    return %arg0, %c0_i32, %c0_i32_0 : i32, i32, i32
  }
  func.func @transform_1(%arg0: i32) -> (i32, i32, i32, i32) {
    %c0_i32 = arith.constant 0 : i32
    %c0_i32_0 = arith.constant 0 : i32
    %c0_i32_1 = arith.constant 0 : i32
    %c0_i32_2 = arith.constant 0 : i32
    %c0_i32_3 = arith.constant 0 : i32
    return %c0_i32, %c0_i32_0, %c0_i32_1, %c0_i32_2 : i32, i32, i32, i32
  }
  func.func @transform_2(%arg0: i32) -> (i32, i32, i32, i32) {
    %c0_i32 = arith.constant 0 : i32
    %c0_i32_0 = arith.constant 0 : i32
    %c0_i32_1 = arith.constant 0 : i32
    %c0_i32_2 = arith.constant 0 : i32
    %c0_i32_3 = arith.constant 0 : i32
    return %c0_i32, %c0_i32_0, %c0_i32_1, %c0_i32_2 : i32, i32, i32, i32
  }
  func.func @transform_3(%arg0: i32) -> (i32, i32, i32) {
    %c0_i32 = arith.constant 0 : i32
    %c0_i32_0 = arith.constant 0 : i32
    %c0_i32_1 = arith.constant 0 : i32
    return %arg0, %c0_i32, %c0_i32_0 : i32, i32, i32
  }
  func.func @transform_4(%arg0: i32) -> (i32, i32, i32) {
    %c0_i32 = arith.constant 0 : i32
    %c0_i32_0 = arith.constant 0 : i32
    %c0_i32_1 = arith.constant 0 : i32
    return %arg0, %c0_i32, %c0_i32_0 : i32, i32, i32
  }
  func.func @transform_5(%arg0: i32) -> (i32, i32, i32) {
    %c0_i32 = arith.constant 0 : i32
    %c0_i32_0 = arith.constant 0 : i32
    %c0_i32_1 = arith.constant 0 : i32
    return %arg0, %c0_i32, %c0_i32_0 : i32, i32, i32
  }
  func.func @transform_6(%arg0: i32) -> (i32, i32, i32) {
    %c0_i32 = arith.constant 0 : i32
    %c0_i32_0 = arith.constant 0 : i32
    %c0_i32_1 = arith.constant 0 : i32
    return %arg0, %c0_i32, %c0_i32_0 : i32, i32, i32
  }
  func.func @transform_7(%arg0: i32) -> (i32, i32) {
    %c0_i32 = arith.constant 0 : i32
    %c0_i32_0 = arith.constant 0 : i32
    %c0_i32_1 = arith.constant 0 : i32
    return %c0_i32, %c0_i32_0 : i32, i32
  }
  func.func @transform_8(%arg0: i32) -> (i32, i32, i32) {
    %c0_i32 = arith.constant 0 : i32
    %c0_i32_0 = arith.constant 0 : i32
    %c0_i32_1 = arith.constant 0 : i32
    return %arg0, %c0_i32, %c0_i32_0 : i32, i32, i32
  }
}

</mosaic_0001>

<bundles_post_ra>
// kernel: adain_up_resblock.1
= control target key start
LH: loop header
LB: loop body
LE: loop exit
PB: predicated region body
PF: predicated region fallthrough
CT: control target
= control target key end

     0   :  { %s9389_s27 = smov 0   ;;  %s10717_s0 = inlined_call_operand.vmem [shape: f32[2,4,1158], index: 0, kind: input, shape index: {}]   ;;  %s10718_s1 = inlined_call_operand.vmem [shape: f32[3,3,4,4], index: 1, kind: input, shape index: {}]   ;;  %s10719_s2 = inlined_call_operand.vmem [shape: f32[3,3,2,2], index: 2, kind: input, shape index: {}]   ;;  %s10720_s3 = inlined_call_operand.vmem [shape: f32[2,2,1], index: 3, kind: input, shape index: {}]   ;;  %s10721_s4 = inlined_call_operand.vmem [shape: f32[2,2,1], index: 4, kind: input, shape index: {}]   ;;  %s10722_s5 = inlined_call_operand.vmem [shape: f32[2,2,1], index: 5, kind: input, shape index: {}]   ;;  %s10723_s6 = inlined_call_operand.vmem [shape: f32[2,2,1], index: 6, kind: input, shape index: {}]   ;;  %s10724_s7 = inlined_call_operand.vmem [shape: f32[1,1088], index: 7, kind: input, shape index: {}]   ;;  %s10725_s8 = inlined_call_operand.vmem [shape: f32[2,2,1088], index: 8, kind: output, shape index: {}]  }
   0x1 LB: > { %s8710_s28 = sadd.s32 4294967295, %s9329_s27   ;;  %p8714_p0 = scmp.ge.s32.totalorder %s9329_s27, 1  ;;  %s9329_s27 = sphi %s9389_s27, %s18_s27  }
   0x2   : > { %p298_p1 = scmp.lt.s32.totalorder %s9329_s27, 3 }
   0x4   : > { %p299_p2 = pnand %p8714_p0, %p298_p1 }
   0x5   : > { %p348_p3 = scmp.lt.s32.totalorder (!%p299_p2), %s8710_s28, 1  ;;  %v9331_v0 = vmov (!%p299_p2), 0.0   ;;  %s9332_s11 = smov (!%p299_p2), 127   ;;  %vm411_vm0 = vcmask (!%p299_p2), 1039360   ;;  %vm424_vm1 = vcmask (!%p299_p2), 1043456   ;;  %vm420_vm2 = vcmask (!%p299_p2), 31744  }
   0x6   : > { %302 = sbr.rel (%p299_p2) target bundleno = 1540 (0x604), region = 52  ;;  %507 = vmatprep.mubr.f32.mxu0 (!%p299_p2), %v9331_v0  ;;  %4367 = vst [vmem:[#allocation2] sm:$0xff] (!%p299_p2), %v9331_v0  ;;  %4619 = vmatprep.mubr.f32.mxu1 (!%p299_p2), %v9331_v0  ;;  %s9333_s12 = smov (!%p299_p2), 126   ;;  %v8721_v21 = vld [vmem:[%s10718_s1 + $0x4] sm:$0xf] (!%p299_p2)  ;;  %vm9340_vm3 = vmmov (!%p299_p2), 0  }
   0x7   : > { %s9334_s13 = smov (!%p299_p2), 93   ;;  %s9335_s14 = smov (!%p299_p2), 94   ;;  %v381_v38 = vld [vmem:[%s10718_s1] sm:$0xf] (!%p299_p2)  ;;  %vm1206_vm4 = vcmask (!%p299_p2), 1031168   ;;  %vm1635_vm5 = vcmask (!%p299_p2), 760832  }
   0x8   : > { %s9336_s15 = smov (!%p299_p2), 92   ;;  %s9337_s16 = smov (!%p299_p2), 59   ;;  %v8750_v52 = vld [vmem:[%s10718_s1 + $0x8] sm:$0xf] (!%p299_p2)  ;;  %vm2037_vm6 = vcmask (!%p299_p2), 769024   ;;  %vm2455_vm7 = vcmask (!%p299_p2), 752640  }
   0x9   : > { %s9338_s17 = smov (!%p299_p2), 60   ;;  %s9339_s20 = smov (!%p299_p2), 58   ;;  %vm10729_vm8 = vcmask (!%p299_p2), 482304   ;;  %vm10728_vm9 = vcmask (!%p299_p2), 490496   ;;  %vm10727_vm10 = vcmask (!%p299_p2), 474112   ;;  %vm4184_vm11 = vcmask (!%p299_p2), 1041408  }
   0xa   : > { %vm4294_vm12 = vcmask (!%p299_p2), 1043458   ;;  %vm10726_vm13 = vcmask (!%p299_p2), 517120   ;;  %vm4310_vm14 = vcmask (!%p299_p2), 519170   ;;  %vm4369_vm15 = vcmask (!%p299_p2), 44034   ;;  %s9343_s24 = smov (!%p299_p2), 35  }
   0xd   : > { %s10761_s28 = smov (!%p348_p3, %s8710_s28), 1 }
   0xe   : > { %s9284_s29 = smul.u32 40, %s10761_s28  ;;  %s10017_s9 = sshll.u32 %s10761_s28, 1 }
   0xf   : > { %s360_s19 = scalar_lea.vmem %s10721_s4, %s10017_s9  ;;  %s356_s23 = scalar_lea.vmem %s10720_s3, %s10017_s9 }
  0x10   : > { %s9406_s10 = scalar_lea.vmem %s10717_s0, %s9284_s29 }
  0x11   : > { %v9409_v1 = vld [vmem:[%s9406_s10 + $0x8] sm:$0xff]  ;;  %v9412_v2 = vld [vmem:[%s9406_s10] sm:$0xff]  ;;  %v9427_v5 = vld [vmem:[%s9406_s10 + $0x10] sm:$0xff] }
  0x12   : > { %397 = vrot.lane.b32.xlu0 %v9409_v1, %s9332_s11  ;;  %393 = vrot.lane.b32.xlu1 %v9412_v2, %s9332_s11  ;;  %v9420_v3 = vcombine.high %v9409_v1, %v9409_v1  ;;  %v9424_v4 = vcombine.high %v9412_v2, %v9412_v2  ;;  %v9435_v6 = vcombine.high %v9427_v5, %v9427_v5  ;;  %v9438_v7 = vld [vmem:[%s9406_s10 + $0x18] sm:$0xff]  ;;  %v9453_v9 = vld [vmem:[%s9406_s10 + $0x20] sm:$0xf] }
  0x13   : > { %v9446_v8 = vcombine.high %v9438_v7, %v9438_v7  ;;  %v1176_v10 = vld [vmem:[%s9406_s10 + $0x20] sm:$0xf] }
  0x14   : > { %v1603_v11 = vld [vmem:[%s9406_s10 + $0x20] sm:$0xf] }
  0x15   : > { %v2425_v12 = vld [vmem:[%s9406_s10 + $0x20] sm:$0xf] }
  0x16   : > { %399 = vrot.lane.b32.xlu1 %v9420_v3, %s9332_s11  ;;  %395 = vrot.lane.b32.xlu0 %v9424_v4, %s9332_s11  ;;  %v9543_v13 = vld [vmem:[%s9406_s10 + $0x20] sm:$0xff] }
  0x17   : > { %v9551_v14 = vcombine.high %v9543_v13, %v9543_v13 }
  0x1a   : > { %403 = vrot.lane.b32.xlu1 %v9435_v6, %s9332_s11  ;;  %401 = vrot.lane.b32.xlu0 %v9427_v5, %s9332_s11 }
  0x1e   : > { %407 = vrot.lane.b32.xlu1 %v9446_v8, %s9332_s11  ;;  %405 = vrot.lane.b32.xlu0 %v9438_v7, %s9332_s11 }
  0x22   : > { %409 = vrot.lane.b32.xlu0 %v9453_v9, %s9332_s11  ;;  %1190 = vrot.lane.b32.xlu1 %v9424_v4, %s9333_s12 }
  0x26   : > { %1188 = vrot.lane.b32.xlu1 %v9412_v2, %s9333_s12  ;;  %1192 = vrot.lane.b32.xlu0 %v9409_v1, %s9333_s12 }
  0x2a   : > { %1194 = vrot.lane.b32.xlu0 %v9420_v3, %s9333_s12  ;;  %1196 = vrot.lane.b32.xlu1 %v9427_v5, %s9333_s12 }
  0x2e   : > { %1198 = vrot.lane.b32.xlu0 %v9435_v6, %s9333_s12  ;;  %1200 = vrot.lane.b32.xlu1 %v9438_v7, %s9333_s12 }
  0x32   : > { %1202 = vrot.lane.b32.xlu0 %v9446_v8, %s9333_s12  ;;  %1204 = vrot.lane.b32.xlu1 %v1176_v10, %s9333_s12 }
  0x36   : > { %1619 = vrot.lane.b32.xlu0 %v9424_v4, %s9334_s13  ;;  %1621 = vrot.lane.b32.xlu1 %v9409_v1, %s9334_s13 }
  0x3a   : > { %1617 = vrot.lane.b32.xlu0 %v9412_v2, %s9334_s13  ;;  %1623 = vrot.lane.b32.xlu1 %v9420_v3, %s9334_s13 }
  0x3e   : > { %1625 = vrot.lane.b32.xlu0 %v9427_v5, %s9334_s13  ;;  %1627 = vrot.lane.b32.xlu1 %v9435_v6, %s9334_s13 }
  0x42   : > { %1629 = vrot.lane.b32.xlu0 %v9438_v7, %s9334_s13  ;;  %1631 = vrot.lane.b32.xlu1 %v9446_v8, %s9334_s13 }
  0x46   : > { %1633 = vrot.lane.b32.xlu0 %v1603_v11, %s9334_s13  ;;  %2021 = vrot.lane.b32.xlu1 %v9424_v4, %s9335_s14 }
  0x4a   : > { %2019 = vrot.lane.b32.xlu1 %v9412_v2, %s9335_s14  ;;  %2023 = vrot.lane.b32.xlu0 %v9409_v1, %s9335_s14 }
  0x4e   : > { %2025 = vrot.lane.b32.xlu0 %v9420_v3, %s9335_s14  ;;  %2027 = vrot.lane.b32.xlu1 %v9427_v5, %s9335_s14 }
  0x52   : > { %2029 = vrot.lane.b32.xlu0 %v9435_v6, %s9335_s14  ;;  %2031 = vrot.lane.b32.xlu1 %v9438_v7, %s9335_s14 }
  0x56   : > { %2033 = vrot.lane.b32.xlu0 %v9446_v8, %s9335_s14  ;;  %2035 = vrot.lane.b32.xlu1 %v1603_v11, %s9335_s14 }
  0x5a   : > { %2439 = vrot.lane.b32.xlu0 %v9424_v4, %s9336_s15  ;;  %2441 = vrot.lane.b32.xlu1 %v9409_v1, %s9336_s15 }
  0x5e   : > { %2437 = vrot.lane.b32.xlu0 %v9412_v2, %s9336_s15  ;;  %2443 = vrot.lane.b32.xlu1 %v9420_v3, %s9336_s15 }
  0x62   : > { %2445 = vrot.lane.b32.xlu0 %v9427_v5, %s9336_s15  ;;  %2447 = vrot.lane.b32.xlu1 %v9435_v6, %s9336_s15 }
  0x66   : > { %2449 = vrot.lane.b32.xlu0 %v9438_v7, %s9336_s15  ;;  %2451 = vrot.lane.b32.xlu1 %v9446_v8, %s9336_s15 }
  0x6a   : > { %2453 = vrot.lane.b32.xlu0 %v2425_v12, %s9336_s15  ;;  %2869 = vrot.lane.b32.xlu1 %v9424_v4, %s9337_s16 }
  0x6e   : > { %2867 = vrot.lane.b32.xlu1 %v9412_v2, %s9337_s16  ;;  %2871 = vrot.lane.b32.xlu0 %v9409_v1, %s9337_s16 }
  0x72   : > { %2875 = vrot.lane.b32.xlu1 %v9427_v5, %s9337_s16  ;;  %2873 = vrot.lane.b32.xlu0 %v9420_v3, %s9337_s16 }
  0x76   : > { %2879 = vrot.lane.b32.xlu1 %v9438_v7, %s9337_s16  ;;  %2877 = vrot.lane.b32.xlu0 %v9435_v6, %s9337_s16 }
  0x7a   : > { %2883 = vrot.lane.b32.xlu1 %v9543_v13, %s9337_s16  ;;  %2881 = vrot.lane.b32.xlu0 %v9446_v8, %s9337_s16 }
  0x7e   : > { %3274 = vrot.lane.b32.xlu1 %v9424_v4, %s9338_s17  ;;  %2885 = vrot.lane.b32.xlu0 %v9551_v14, %s9337_s16 }
  0x82   : > { %3272 = vrot.lane.b32.xlu1 %v9412_v2, %s9338_s17  ;;  %3276 = vrot.lane.b32.xlu0 %v9409_v1, %s9338_s17 }
  0x84   : > { %v398_v15 = vpop.permute.xlu0 %397  ;;  %v394_v16 = vpop.permute.xlu1 %393 }
  0x86   : > { %3280 = vrot.lane.b32.xlu1 %v9427_v5, %s9338_s17  ;;  %3278 = vrot.lane.b32.xlu0 %v9420_v3, %s9338_s17 }
  0x88   : > { %v400_v17 = vpop.permute.xlu1 %399  ;;  %v396_v18 = vpop.permute.xlu0 %395 }
  0x89   : > { %v413_v19 = vsel %vm411_vm0, %v396_v18, %v398_v15  ;;  %v412_v20 = vsel %vm411_vm0, %v394_v16, %v396_v18  ;;  %v414_v25 = vsel %vm411_vm0, %v398_v15, %v400_v17 }
  0x8a   : > { %8722 = vmatprep.subr.msk.mxu0 %vm424_vm1, %v413_v19  ;;  %3284 = vrot.lane.b32.xlu1 %v9438_v7, %s9338_s17 }
  0x8b   : > { %8723 = vmatpush1.msk.msra.mxu0 %vm424_vm1, %v412_v20  ;;  %3282 = vrot.lane.b32.xlu0 %v9435_v6, %s9338_s17 }
  0x8c   : > { %v404_v22 = vpop.permute.xlu1 %403  ;;  %8724 = vmatmul.mubr.msk.f32.vlgmr.msra.gmra.mrb[0].mxu0 %vm420_vm2, %v8721_v21  ;;  %v402_v23 = vpop.permute.xlu0 %401 }
  0x8d   : > { %v415_v24 = vsel %vm411_vm0, %v400_v17, %v402_v23  ;;  %578 = vmatprep.mubr.f32.mxu0 %v9331_v0  ;;  %v416_v29 = vsel %vm411_vm0, %v402_v23, %v404_v22 }
  0x8e   : > { %8725 = vmatprep.subr.msk.mxu0 %vm424_vm1, %v415_v24  ;;  %3288 = vrot.lane.b32.xlu1 %v9543_v13, %s9338_s17 }
  0x8f   : > { %8726 = vmatpush1.msk.msra.mxu0 %vm424_vm1, %v414_v25  ;;  %3286 = vrot.lane.b32.xlu0 %v9446_v8, %s9338_s17 }
  0x90   : > { %v408_v26 = vpop.permute.xlu1 %407  ;;  %8727 = vmatmul.mubr.msk.f32.vlgmr.msra.gmra.mrb[2].mxu0 %vm420_vm2, %v8721_v21  ;;  %v406_v27 = vpop.permute.xlu0 %405 }
  0x91   : > { %v417_v28 = vsel %vm411_vm0, %v404_v22, %v406_v27  ;;  %649 = vmatprep.mubr.f32.mxu0 %v9331_v0  ;;  %v418_v33 = vsel %vm411_vm0, %v406_v27, %v408_v26  ;;  %v8765_v27 = vld [vmem:[%s10718_s1 + $0xc] sm:$0xf] }
  0x92   : > { %8728 = vmatprep.subr.msk.mxu0 %vm424_vm1, %v417_v28  ;;  %3696 = vrot.lane.b32.xlu1 %v9424_v4, %s9339_s20 }
  0x93   : > { %8729 = vmatpush1.msk.msra.mxu0 %vm424_vm1, %v416_v29  ;;  %3290 = vrot.lane.b32.xlu0 %v9551_v14, %s9338_s17 }
  0x94   : > { %8730 = vmatmul.mubr.msk.f32.vlgmr.msra.gmra.mrb[4].mxu0 %vm420_vm2, %v8721_v21  ;;  %v410_v30 = vpop.permute.xlu0 %409  ;;  %v1191_v31 = vpop.permute.xlu1 %1190 }
  0x95   : > { %v419_v32 = vsel %vm411_vm0, %v408_v26, %v410_v30  ;;  %720 = vmatprep.mubr.f32.mxu0 %v9331_v0 }
  0x96   : > { %8731 = vmatprep.subr.msk.mxu0 %vm424_vm1, %v419_v32  ;;  %3694 = vrot.lane.b32.xlu1 %v9412_v2, %s9339_s20 }
  0x97   : > { %8732 = vmatpush1.msk.msra.mxu0 %vm424_vm1, %v418_v33  ;;  %3698 = vrot.lane.b32.xlu0 %v9409_v1, %s9339_s20 }
  0x98   : > { %8733 = vmatmul.mubr.msk.f32.vlgmr.msra.gmra.mrb[6].mxu0 %vm420_vm2, %v8721_v21  ;;  %9034 = vmatprep.subr.mxu0 %v9331_v0  ;;  %v1189_v34 = vpop.permute.xlu1 %1188  ;;  %v1193_v35 = vpop.permute.xlu0 %1192 }
  0x99   : > { %9035 = vmatpush3.msk.msra.mxu0 %vm424_vm1, %v410_v30  ;;  %9036 = vmatprep.mubr.msk.f32.mxu0 %vm9340_vm3, %v9331_v0  ;;  %v1208_v45 = vsel %vm1206_vm4, %v1191_v31, %v1193_v35  ;;  %v1207_v49 = vsel %vm1206_vm4, %v1189_v34, %v1191_v31 }
  0x9a   : > { %8736 = vmatprep.subr.msk.mxu0 %vm424_vm1, %v9424_v4  ;;  %3702 = vrot.lane.b32.xlu1 %v9427_v5, %s9339_s20 }
  0x9b   : > { %3700 = vrot.lane.b32.xlu0 %v9420_v3, %s9339_s20 }
  0x9c   : > { %9037 = vmatmul.mubr.msk.f32.vlgmr.msra.gmra.mrb[8].mxu0 %vm420_vm2, %v8721_v21  ;;  %v1195_v36 = vpop.permute.xlu0 %1194  ;;  %v1197_v37 = vpop.permute.xlu1 %1196 }
  0x9d   : > { %8737 = vmatpush1.msk.msra.mxu0 %vm424_vm1, %v9412_v2  ;;  %882 = vmatprep.mubr.f32.mxu0 %v9331_v0  ;;  %v1210_v48 = vsel %vm1206_vm4, %v1195_v36, %v1197_v37  ;;  %v1209_v54 = vsel %vm1206_vm4, %v1193_v35, %v1195_v36 }
  0x9e   : > { %8739 = vmatprep.subr.msk.mxu0 %vm424_vm1, %v9420_v3  ;;  %3706 = vrot.lane.b32.xlu1 %v9438_v7, %s9339_s20 }
  0x9f   : > { %3704 = vrot.lane.b32.xlu0 %v9435_v6, %s9339_s20 }
  0xa0   : > { %8738 = vmatmul.mubr.msk.f32.vlgmr.msra.gmra.mrb[0].mxu0 %vm420_vm2, %v381_v38  ;;  %v1199_v39 = vpop.permute.xlu0 %1198  ;;  %v1201_v40 = vpop.permute.xlu1 %1200 }
  0xa1   : > { %8740 = vmatpush1.msk.msra.mxu0 %vm424_vm1, %v9409_v1  ;;  %953 = vmatprep.mubr.f32.mxu0 %v9331_v0  ;;  %v1212_v53 = vsel %vm1206_vm4, %v1199_v39, %v1201_v40  ;;  %v1211_v58 = vsel %vm1206_vm4, %v1197_v37, %v1199_v39 }
  0xa2   : > { %8742 = vmatprep.subr.msk.mxu0 %vm424_vm1, %v9435_v6  ;;  %3710 = vrot.lane.b32.xlu1 %v9543_v13, %s9339_s20 }
  0xa3   : > { %3708 = vrot.lane.b32.xlu0 %v9446_v8, %s9339_s20 }
  0xa4   : > { %8741 = vmatmul.mubr.msk.f32.vlgmr.msra.gmra.mrb[2].mxu0 %vm420_vm2, %v381_v38  ;;  %v1203_v41 = vpop.permute.xlu0 %1202  ;;  %v1205_v42 = vpop.permute.xlu1 %1204 }
  0xa5   : > { %8743 = vmatpush1.msk.msra.mxu0 %vm424_vm1, %v9427_v5  ;;  %1024 = vmatprep.mubr.f32.mxu0 %v9331_v0  ;;  %v1214_v57 = vsel %vm1206_vm4, %v1203_v41, %v1205_v42  ;;  %v1213_v61 = vsel %vm1206_vm4, %v1201_v40, %v1203_v41 }
  0xa6   : > { %8745 = vmatprep.subr.msk.mxu0 %vm424_vm1, %v9446_v8  ;;  %v8766_v8 = vld [vmem:[%s10718_s1 + $0x10] sm:$0xf] }
  0xa7   : > { %3712 = vrot.lane.b32.xlu0 %v9551_v14, %s9339_s20 }
  0xa8   : > { %8744 = vmatmul.mubr.msk.f32.vlgmr.msra.gmra.mrb[4].mxu0 %vm420_vm2, %v381_v38  ;;  %v1620_v43 = vpop.permute.xlu0 %1619  ;;  %v1622_v44 = vpop.permute.xlu1 %1621 }
  0xa9   : > { %8746 = vmatpush1.msk.msra.mxu0 %vm424_vm1, %v9438_v7  ;;  %1095 = vmatprep.mubr.f32.mxu0 %v9331_v0  ;;  %v1637_v1 = vsel %vm1635_vm5, %v1620_v43, %v1622_v44 }
  0xaa   : > { %9039 = vmatprep.subr.mxu0 %v9331_v0 }
  0xac   : > { %8747 = vmatmul.mubr.msk.f32.vlgmr.msra.gmra.mrb[6].mxu0 %vm420_vm2, %v381_v38  ;;  %v1618_v46 = vpop.permute.xlu0 %1617  ;;  %v1624_v47 = vpop.permute.xlu1 %1623 }
  0xad   : > { %9040 = vmatpush3.msk.msra.mxu0 %vm424_vm1, %v9453_v9  ;;  %9041 = vmatprep.mubr.msk.f32.mxu0 %vm9340_vm3, %v9331_v0  ;;  %v1636_v5 = vsel %vm1635_vm5, %v1618_v46, %v1620_v43  ;;  %v1638_v10 = vsel %vm1635_vm5, %v1622_v44, %v1624_v47  ;;  %v8795_v44 = vld [vmem:[%s10718_s1 + $0x14] sm:$0xf] }
  0xae   : > { %8751 = vmatprep.subr.msk.mxu0 %vm424_vm1, %v1208_v45 }
  0xb0   : > { %9042 = vmatmul.mubr.msk.f32.vlgmr.msra.gmra.mrb[8].mxu0 %vm420_vm2, %v381_v38  ;;  %v1626_v50 = vpop.permute.xlu0 %1625  ;;  %v1628_v51 = vpop.permute.xlu1 %1627 }
  0xb1   : > { %8752 = vmatpush1.msk.msra.mxu0 %vm424_vm1, %v1207_v49  ;;  %1300 = vmatprep.mubr.f32.mxu0 %v9331_v0  ;;  %v1639_v4 = vsel %vm1635_vm5, %v1624_v47, %v1626_v50  ;;  %v1640_v14 = vsel %vm1635_vm5, %v1626_v50, %v1628_v51 }
  0xb2   : > { %8754 = vmatprep.subr.msk.mxu0 %vm424_vm1, %v1210_v48 }
  0xb4   : > { %8753 = vmatmul.mubr.msk.f32.vlgmr.msra.gmra.mrb[0].mxu0 %vm420_vm2, %v8750_v52  ;;  %v1630_v55 = vpop.permute.xlu0 %1629  ;;  %v1632_v56 = vpop.permute.xlu1 %1631 }
  0xb5   : > { %8755 = vmatpush1.msk.msra.mxu0 %vm424_vm1, %v1209_v54  ;;  %1371 = vmatprep.mubr.f32.mxu0 %v9331_v0  ;;  %v1641_v9 = vsel %vm1635_vm5, %v1628_v51, %v1630_v55  ;;  %v1642_v17 = vsel %vm1635_vm5, %v1630_v55, %v1632_v56 }
  0xb6   : > { %8757 = vmatprep.subr.msk.mxu0 %vm424_vm1, %v1212_v53 }
  0xb8   : > { %8756 = vmatmul.mubr.msk.f32.vlgmr.msra.gmra.mrb[2].mxu0 %vm420_vm2, %v8750_v52  ;;  %v1634_v59 = vpop.permute.xlu0 %1633  ;;  %v2022_v60 = vpop.permute.xlu1 %2021 }
  0xb9   : > { %8758 = vmatpush1.msk.msra.mxu0 %vm424_vm1, %v1211_v58  ;;  %1442 = vmatprep.mubr.f32.mxu0 %v9331_v0  ;;  %v1643_v13 = vsel %vm1635_vm5, %v1632_v56, %v1634_v59 }
  0xba   : > { %8760 = vmatprep.subr.msk.mxu0 %vm424_vm1, %v1214_v57 }
  0xbc   : > { %8759 = vmatmul.mubr.msk.f32.vlgmr.msra.gmra.mrb[4].mxu0 %vm420_vm2, %v8750_v52  ;;  %v2020_v62 = vpop.permute.xlu1 %2019  ;;  %v2024_v63 = vpop.permute.xlu0 %2023 }
  0xbd   : > { %8761 = vmatpush1.msk.msra.mxu0 %vm424_vm1, %v1213_v61  ;;  %1513 = vmatprep.mubr.f32.mxu0 %v9331_v0  ;;  %v2039_v20 = vsel %vm2037_vm6, %v2022_v60, %v2024_v63  ;;  %v2038_v24 = vsel %vm2037_vm6, %v2020_v62, %v2022_v60 }
  0xbe   : > { %9044 = vmatprep.subr.mxu0 %v9331_v0 }
  0xc0   : > { %8762 = vmatmul.mubr.msk.f32.vlgmr.msra.gmra.mrb[6].mxu0 %vm420_vm2, %v8750_v52  ;;  %v2026_v2 = vpop.permute.xlu0 %2025  ;;  %v9688_v3 = vpop.permute.xlu1 %2027 }
  0xc1   : > { %9045 = vmatpush3.msk.msra.mxu0 %vm424_vm1, %v1205_v42  ;;  %9046 = vmatprep.mubr.msk.f32.mxu0 %vm9340_vm3, %v9331_v0  ;;  %v2041_v23 = vsel %vm2037_vm6, %v2026_v2, %v9688_v3  ;;  %v2040_v29 = vsel %vm2037_vm6, %v2024_v63, %v2026_v2 }
  0xc2   : > { %8767 = vmatprep.subr.msk.mxu0 %vm424_vm1, %v1637_v1 }
  0xc4   : > { %9047 = vmatmul.mubr.msk.f32.vlgmr.msra.gmra.mrb[8].mxu0 %vm420_vm2, %v8750_v52  ;;  %v2030_v6 = vpop.permute.xlu0 %2029  ;;  %v2032_v7 = vpop.permute.xlu1 %2031 }
  0xc5   : > { %8768 = vmatpush1.msk.msra.mxu0 %vm424_vm1, %v1636_v5  ;;  %1729 = vmatprep.mubr.f32.mxu0 %v9331_v0  ;;  %v2043_v28 = vsel %vm2037_vm6, %v2030_v6, %v2032_v7  ;;  %v2042_v33 = vsel %vm2037_vm6, %v9688_v3, %v2030_v6 }
  0xc6   : > { %8770 = vmatprep.subr.msk.mxu0 %vm424_vm1, %v1639_v4 }
  0xc8   : > { %8769 = vmatmul.mubr.msk.f32.vlgmr.msra.gmra.mrb[0].mxu0 %vm420_vm2, %v8766_v8  ;;  %v2034_v11 = vpop.permute.xlu0 %2033  ;;  %v2036_v12 = vpop.permute.xlu1 %2035 }
  0xc9   : > { %8771 = vmatpush1.msk.msra.mxu0 %vm424_vm1, %v1638_v10  ;;  %1800 = vmatprep.mubr.f32.mxu0 %v9331_v0  ;;  %v2045_v32 = vsel %vm2037_vm6, %v2034_v11, %v2036_v12  ;;  %v2044_v36 = vsel %vm2037_vm6, %v2032_v7, %v2034_v11 }
  0xca   : > { %8773 = vmatprep.subr.msk.mxu0 %vm424_vm1, %v1641_v9 }
  0xcc   : > { %8772 = vmatmul.mubr.msk.f32.vlgmr.msra.gmra.mrb[2].mxu0 %vm420_vm2, %v8766_v8  ;;  %v2440_v15 = vpop.permute.xlu0 %2439  ;;  %v9712_v16 = vpop.permute.xlu1 %2441 }
  0xcd   : > { %8774 = vmatpush1.msk.msra.mxu0 %vm424_vm1, %v1640_v14  ;;  %1871 = vmatprep.mubr.f32.mxu0 %v9331_v0  ;;  %v2457_v39 = vsel %vm2455_vm7, %v2440_v15, %v9712_v16  ;;  %v8810_v14 = vld [vmem:[%s10718_s1 + $0x18] sm:$0xf] }
  0xce   : > { %8776 = vmatprep.subr.msk.mxu0 %vm424_vm1, %v1643_v13 }
  0xd0   : > { %8775 = vmatmul.mubr.msk.f32.vlgmr.msra.gmra.mrb[4].mxu0 %vm420_vm2, %v8766_v8  ;;  %v2438_v18 = vpop.permute.xlu0 %2437  ;;  %v2444_v19 = vpop.permute.xlu1 %2443 }
  0xd1   : > { %8777 = vmatpush1.msk.msra.mxu0 %vm424_vm1, %v1642_v17  ;;  %1942 = vmatprep.mubr.f32.mxu0 %v9331_v0  ;;  %v2456_v43 = vsel %vm2455_vm7, %v2438_v18, %v2440_v15  ;;  %v2458_v46 = vsel %vm2455_vm7, %v9712_v16, %v2444_v19 }
  0xd2   : > { %9049 = vmatprep.subr.mxu0 %v9331_v0 }
  0xd4   : > { %8778 = vmatmul.mubr.msk.f32.vlgmr.msra.gmra.mrb[6].mxu0 %vm420_vm2, %v8766_v8  ;;  %v2446_v21 = vpop.permute.xlu0 %2445  ;;  %v2448_v22 = vpop.permute.xlu1 %2447 }
  0xd5   : > { %9050 = vmatpush3.msk.msra.mxu0 %vm424_vm1, %v1634_v59  ;;  %9051 = vmatprep.mubr.msk.f32.mxu0 %vm9340_vm3, %v9331_v0  ;;  %v2459_v42 = vsel %vm2455_vm7, %v2444_v19, %v2446_v21  ;;  %v2460_v50 = vsel %vm2455_vm7, %v2446_v21, %v2448_v22  ;;  %v8811_v59 = vld [vmem:[%s10718_s1 + $0x1c] sm:$0xf] }
  0xd6   : > { %8781 = vmatprep.subr.msk.mxu0 %vm424_vm1, %v2039_v20 }
  0xd8   : > { %9052 = vmatmul.mubr.msk.f32.vlgmr.msra.gmra.mrb[8].mxu0 %vm420_vm2, %v8766_v8  ;;  %v2450_v25 = vpop.permute.xlu0 %2449  ;;  %v2452_v26 = vpop.permute.xlu1 %2451 }
  0xd9   : > { %8782 = vmatpush1.msk.msra.mxu0 %vm424_vm1, %v2038_v24  ;;  %2131 = vmatprep.mubr.f32.mxu0 %v9331_v0  ;;  %v2461_v45 = vsel %vm2455_vm7, %v2448_v22, %v2450_v25  ;;  %v2462_v53 = vsel %vm2455_vm7, %v2450_v25, %v2452_v26 }
  0xda   : > { %8784 = vmatprep.subr.msk.mxu0 %vm424_vm1, %v2041_v23 }
  0xdc   : > { %8783 = vmatmul.mubr.msk.f32.vlgmr.msra.gmra.mrb[0].mxu0 %vm420_vm2, %v8765_v27  ;;  %v2454_v30 = vpop.permute.xlu0 %2453  ;;  %v9741_v31 = vpop.permute.xlu1 %2869 }
  0xdd   : > { %8785 = vmatpush1.msk.msra.mxu0 %vm424_vm1, %v2040_v29  ;;  %2202 = vmatprep.mubr.f32.mxu0 %v9331_v0  ;;  %v2463_v49 = vsel %vm2455_vm7, %v2452_v26, %v2454_v30 }
  0xde   : > { %8787 = vmatprep.subr.msk.mxu0 %vm424_vm1, %v2043_v28 }
  0xe0   : > { %8786 = vmatmul.mubr.msk.f32.vlgmr.msra.gmra.mrb[2].mxu0 %vm420_vm2, %v8765_v27  ;;  %v2868_v34 = vpop.permute.xlu1 %2867  ;;  %v9750_v35 = vpop.permute.xlu0 %2871 }
  0xe1   : > { %8788 = vmatpush1.msk.msra.mxu0 %vm424_vm1, %v2042_v33  ;;  %2273 = vmatprep.mubr.f32.mxu0 %v9331_v0  ;;  %v2889_v54 = vsel %vm10729_vm8, %v9741_v31, %v9750_v35  ;;  %v2888_v58 = vsel %vm10729_vm8, %v2868_v34, %v9741_v31 }
  0xe2   : > { %8790 = vmatprep.subr.msk.mxu0 %vm424_vm1, %v2045_v32 }
  0xe4   : > { %8789 = vmatmul.mubr.msk.f32.vlgmr.msra.gmra.mrb[4].mxu0 %vm420_vm2, %v8765_v27  ;;  %v9757_v37 = vpop.permute.xlu1 %2875  ;;  %v2874_v38 = vpop.permute.xlu0 %2873 }
  0xe5   : > { %8791 = vmatpush1.msk.msra.mxu0 %vm424_vm1, %v2044_v36  ;;  %2344 = vmatprep.mubr.f32.mxu0 %v9331_v0  ;;  %v2891_v57 = vsel %vm10729_vm8, %v2874_v38, %v9757_v37  ;;  %v2890_v63 = vsel %vm10729_vm8, %v9750_v35, %v2874_v38 }
  0xe6   : > { %9054 = vmatprep.subr.mxu0 %v9331_v0 }
  0xe8   : > { %8792 = vmatmul.mubr.msk.f32.vlgmr.msra.gmra.mrb[6].mxu0 %vm420_vm2, %v8765_v27  ;;  %v2880_v40 = vpop.permute.xlu1 %2879  ;;  %v2878_v41 = vpop.permute.xlu0 %2877 }
  0xe9   : > { %9055 = vmatpush3.msk.msra.mxu0 %vm424_vm1, %v2036_v12  ;;  %9056 = vmatprep.mubr.msk.f32.mxu0 %vm9340_vm3, %v9331_v0  ;;  %v2893_v62 = vsel %vm10729_vm8, %v2878_v41, %v2880_v40  ;;  %v2892_v2 = vsel %vm10729_vm8, %v9757_v37, %v2878_v41  ;;  %v4130_v41 = vlaneseq }
  0xea   : > { %8796 = vmatprep.subr.msk.mxu0 %vm424_vm1, %v2457_v39 }
  0xec   : > { %9057 = vmatmul.mubr.msk.f32.vlgmr.msra.gmra.mrb[8].mxu0 %vm420_vm2, %v8765_v27  ;;  %v2884_v47 = vpop.permute.xlu1 %2883  ;;  %v2882_v48 = vpop.permute.xlu0 %2881 }
  0xed   : > { %8797 = vmatpush1.msk.msra.mxu0 %vm424_vm1, %v2456_v43  ;;  %2549 = vmatprep.mubr.f32.mxu0 %v9331_v0  ;;  %v2895_v1 = vsel %vm10729_vm8, %v2882_v48, %v2884_v47  ;;  %v2894_v5 = vsel %vm10729_vm8, %v2880_v40, %v2882_v48  ;;  %v9341_v40 = vmov 0  }
  0xee   : > { %8799 = vmatprep.subr.msk.mxu0 %vm424_vm1, %v2459_v42  ;;  %9307 = vset.pattern.permute.xlu0 %v9341_v40  ;;  %v9906_v42 = vshrl.u32 %v4130_v41, 7 }
  0xef   : > { %9308 = vset.pattern.permute.xlu1 %v9341_v40 }
  0xf0   : > { %8798 = vmatmul.mubr.msk.f32.vlgmr.msra.gmra.mrb[0].mxu0 %vm420_vm2, %v8795_v44  ;;  %v3275_v51 = vpop.permute.xlu1 %3274  ;;  %v2886_v52 = vpop.permute.xlu0 %2885  ;;  %v4132_v43 = vsub.s32 0, %v9906_v42  ;;  %v4144_v48 = vsub.s32 3, %v9906_v42 }
  0xf1   : > { %8800 = vmatpush1.msk.msra.mxu0 %vm424_vm1, %v2458_v46  ;;  %2620 = vmatprep.mubr.f32.mxu0 %v9331_v0  ;;  %v2896_v9 = vsel %vm10729_vm8, %v2884_v47, %v2886_v52  ;;  %vm4455_vm8 = vcmask 803840  }
  0xf2   : > { %8802 = vmatprep.subr.msk.mxu0 %vm424_vm1, %v2461_v45  ;;  %v4136_v45 = vsub.s32 1, %v9906_v42 }
  0xf4   : > { %8801 = vmatmul.mubr.msk.f32.vlgmr.msra.gmra.mrb[2].mxu0 %vm420_vm2, %v8795_v44  ;;  %v3273_v55 = vpop.permute.xlu1 %3272  ;;  %v3277_v56 = vpop.permute.xlu0 %3276 }
  0xf5   : > { %8803 = vmatpush1.msk.msra.mxu0 %vm424_vm1, %v2460_v50  ;;  %2691 = vmatprep.mubr.f32.mxu0 %v9331_v0  ;;  %v3294_v8 = vsel %vm10728_vm9, %v3275_v51, %v3277_v56  ;;  %v3293_v11 = vsel %vm10728_vm9, %v3273_v55, %v3275_v51  ;;  %v4152_v51 = vsub.s32 5, %v9906_v42 }
  0xf6   : > { %8805 = vmatprep.subr.msk.mxu0 %vm424_vm1, %v2463_v49  ;;  %v4148_v49 = vsub.s32 4, %v9906_v42 }
  0xf8   : > { %8804 = vmatmul.mubr.msk.f32.vlgmr.msra.gmra.mrb[4].mxu0 %vm420_vm2, %v8795_v44  ;;  %v3281_v60 = vpop.permute.xlu1 %3280  ;;  %v3279_v61 = vpop.permute.xlu0 %3278 }
  0xf9   : > { %8806 = vmatpush1.msk.msra.mxu0 %vm424_vm1, %v2462_v53  ;;  %2762 = vmatprep.mubr.f32.mxu0 %v9331_v0  ;;  %v3296_v10 = vsel %vm10728_vm9, %v3279_v61, %v3281_v60  ;;  %v3295_v16 = vsel %vm10728_vm9, %v3277_v56, %v3279_v61 }
  0xfa   : > { %9059 = vmatprep.subr.mxu0 %v9331_v0 }
  0xfc   : > { %8807 = vmatmul.mubr.msk.f32.vlgmr.msra.gmra.mrb[6].mxu0 %vm420_vm2, %v8795_v44  ;;  %v3285_v3 = vpop.permute.xlu1 %3284 }
  0xfd   : > { %9060 = vmatpush3.msk.msra.mxu0 %vm424_vm1, %v2454_v30  ;;  %9061 = vmatprep.mubr.msk.f32.mxu0 %vm9340_vm3, %v9331_v0  ;;  %v3283_v4 = vpop.permute.xlu0 %3282  ;;  %v8840_v30 = vld [vmem:[%s10718_s1 + $0x20] sm:$0xf] }
  0xfe   : > { %8812 = vmatprep.subr.msk.mxu0 %vm424_vm1, %v2889_v54  ;;  %v3298_v15 = vsel %vm10728_vm9, %v3283_v4, %v3285_v3  ;;  %v3297_v20 = vsel %vm10728_vm9, %v3281_v60, %v3283_v4 }
 0x100   : > { %9062 = vmatmul.mubr.msk.f32.vlgmr.msra.gmra.mrb[8].mxu0 %vm420_vm2, %v8795_v44  ;;  %v3289_v6 = vpop.permute.xlu1 %3288  ;;  %v374_v44 = vld [vmem:[%s10724_s7] sm:$0xff] }
 0x101   : > { %8813 = vmatpush1.msk.msra.mxu0 %vm424_vm1, %v2888_v58  ;;  %2982 = vmatprep.mubr.f32.mxu0 %v9331_v0  ;;  %v3287_v7 = vpop.permute.xlu0 %3286  ;;  %v9913_v46 = vrot.slane %v374_v44, %v4132_v43  ;;  %v9916_v47 = vrot.slane %v374_v44, %v4136_v45  ;;  %v9931_v56 = vrot.slane %v374_v44, %v4144_v48  ;;  %v4156_v58 = vsub.s32 6, %v9906_v42 }
 0x102   : > { %8815 = vmatprep.subr.msk.mxu0 %vm424_vm1, %v2891_v57  ;;  %v3300_v19 = vsel %vm10728_vm9, %v3287_v7, %v3289_v6  ;;  %v3299_v21 = vsel %vm10728_vm9, %v3285_v3, %v3287_v7  ;;  %v9933_v57 = vrot.slane %v374_v44, %v4148_v49  ;;  %v9943_v4 = vrot.slane %v374_v44, %v4152_v51 }
 0x104   : > { %8814 = vmatmul.mubr.msk.f32.vlgmr.msra.gmra.mrb[0].mxu0 %vm420_vm2, %v8811_v59  ;;  %v3697_v12 = vpop.permute.xlu1 %3696 }
 0x105   : > { %8816 = vmatpush1.msk.msra.mxu0 %vm424_vm1, %v2890_v63  ;;  %3053 = vmatprep.mubr.f32.mxu0 %v9331_v0  ;;  %v3291_v13 = vpop.permute.xlu0 %3290 }
 0x106   : > { %8818 = vmatprep.subr.msk.mxu0 %vm424_vm1, %v2893_v62  ;;  %v3301_v25 = vsel %vm10728_vm9, %v3289_v6, %v3291_v13  ;;  %v4160_v62 = vsub.s32 7, %v9906_v42  ;;  %vm4439_vm9 = vcmask 285696  }
 0x108   : > { %8817 = vmatmul.mubr.msk.f32.vlgmr.msra.gmra.mrb[2].mxu0 %vm420_vm2, %v8811_v59  ;;  %v3695_v17 = vpop.permute.xlu1 %3694 }
 0x109   : > { %8819 = vmatpush1.msk.msra.mxu0 %vm424_vm1, %v2892_v2  ;;  %3124 = vmatprep.mubr.f32.mxu0 %v9331_v0  ;;  %v3699_v18 = vpop.permute.xlu0 %3698  ;;  %v3715_v29 = vsel %vm10727_vm10, %v3695_v17, %v3697_v12  ;;  %v9957_v17 = vrot.slane %v374_v44, %v4160_v62 }
 0x10a   : > { %8821 = vmatprep.subr.msk.mxu0 %vm424_vm1, %v2895_v1  ;;  %v3716_v24 = vsel %vm10727_vm10, %v3697_v12, %v3699_v18 }
 0x10c   : > { %8820 = vmatmul.mubr.msk.f32.vlgmr.msra.gmra.mrb[4].mxu0 %vm420_vm2, %v8811_v59  ;;  %v3703_v23 = vpop.permute.xlu1 %3702 }
 0x10d   : > { %8822 = vmatpush1.msk.msra.mxu0 %vm424_vm1, %v2894_v5  ;;  %3195 = vmatprep.mubr.f32.mxu0 %v9331_v0  ;;  %v3701_v22 = vpop.permute.xlu0 %3700 }
 0x10e   : > { %9064 = vmatprep.subr.mxu0 %v9331_v0  ;;  %v3718_v28 = vsel %vm10727_vm10, %v3701_v22, %v3703_v23  ;;  %v3717_v32 = vsel %vm10727_vm10, %v3699_v18, %v3701_v22 }
 0x110   : > { %8823 = vmatmul.mubr.msk.f32.vlgmr.msra.gmra.mrb[6].mxu0 %vm420_vm2, %v8811_v59  ;;  %v3707_v27 = vpop.permute.xlu1 %3706 }
 0x111   : > { %9065 = vmatpush3.msk.msra.mxu0 %vm424_vm1, %v2896_v9  ;;  %9066 = vmatprep.mubr.msk.f32.mxu0 %vm9340_vm3, %v9331_v0  ;;  %v3705_v26 = vpop.permute.xlu0 %3704 }
 0x112   : > { %8826 = vmatprep.subr.msk.mxu0 %vm424_vm1, %v3294_v8  ;;  %v3720_v31 = vsel %vm10727_vm10, %v3705_v26, %v3707_v27  ;;  %v3719_v36 = vsel %vm10727_vm10, %v3703_v23, %v3705_v26 }
 0x114   : > { %9067 = vmatmul.mubr.msk.f32.vlgmr.msra.gmra.mrb[8].mxu0 %vm420_vm2, %v8811_v59  ;;  %v3711_v34 = vpop.permute.xlu1 %3710 }
 0x115   : > { %8827 = vmatpush1.msk.msra.mxu0 %vm424_vm1, %v3293_v11  ;;  %3387 = vmatprep.mubr.f32.mxu0 %v9331_v0  ;;  %v3709_v33 = vpop.permute.xlu0 %3708 }
 0x116   : > { %8829 = vmatprep.subr.msk.mxu0 %vm424_vm1, %v3296_v10  ;;  %v3722_v35 = vsel %vm10727_vm10, %v3709_v33, %v3711_v34  ;;  %v3721_v37 = vsel %vm10727_vm10, %v3707_v27, %v3709_v33 }
 0x118   : > { %8828 = vmatmul.mubr.msk.f32.vlgmr.msra.gmra.mrb[0].mxu0 %vm420_vm2, %v8810_v14 }
 0x119   : > { %8830 = vmatpush1.msk.msra.mxu0 %vm424_vm1, %v3295_v16  ;;  %3458 = vmatprep.mubr.f32.mxu0 %v9331_v0  ;;  %v3713_v38 = vpop.permute.xlu0 %3712  ;;  %v9955_v16 = vrot.slane %v374_v44, %v4156_v58 }
 0x11a   : > { %8832 = vmatprep.subr.msk.mxu0 %vm424_vm1, %v3298_v15  ;;  %v3723_v39 = vsel %vm10727_vm10, %v3711_v34, %v3713_v38  ;;  %vm4451_vm10 = vcmask 1047558  }
 0x11c   : > { %8831 = vmatmul.mubr.msk.f32.vlgmr.msra.gmra.mrb[2].mxu0 %vm420_vm2, %v8810_v14 }
 0x11d   : > { %8833 = vmatpush1.msk.msra.mxu0 %vm424_vm1, %v3297_v20  ;;  %3529 = vmatprep.mubr.f32.mxu0 %v9331_v0 }
 0x11e   : > { %8835 = vmatprep.subr.msk.mxu0 %vm424_vm1, %v3300_v19 }
 0x120   : > { %8834 = vmatmul.mubr.msk.f32.vlgmr.msra.gmra.mrb[4].mxu0 %vm420_vm2, %v8810_v14 }
 0x121   : > { %8836 = vmatpush1.msk.msra.mxu0 %vm424_vm1, %v3299_v21  ;;  %3600 = vmatprep.mubr.f32.mxu0 %v9331_v0 }
 0x122   : > { %9069 = vmatprep.subr.mxu0 %v9331_v0 }
 0x124   : > { %8837 = vmatmul.mubr.msk.f32.vlgmr.msra.gmra.mrb[6].mxu0 %vm420_vm2, %v8810_v14 }
 0x125   : > { %9070 = vmatpush3.msk.msra.mxu0 %vm424_vm1, %v3301_v25  ;;  %9071 = vmatprep.mubr.msk.f32.mxu0 %vm9340_vm3, %v9331_v0 }
 0x126   : > { %8841 = vmatprep.subr.msk.mxu0 %vm424_vm1, %v3716_v24 }
 0x128   : > { %9072 = vmatmul.mubr.msk.f32.vlgmr.msra.gmra.mrb[8].mxu0 %vm420_vm2, %v8810_v14 }
 0x129   : > { %8842 = vmatpush1.msk.msra.mxu0 %vm424_vm1, %v3715_v29  ;;  %3809 = vmatprep.mubr.f32.mxu0 %v9331_v0 }
 0x12a   : > { %8844 = vmatprep.subr.msk.mxu0 %vm424_vm1, %v3718_v28 }
 0x12c   : > { %8843 = vmatmul.mubr.msk.f32.vlgmr.msra.gmra.mrb[0].mxu0 %vm420_vm2, %v8840_v30 }
 0x12d   : > { %8845 = vmatpush1.msk.msra.mxu0 %vm424_vm1, %v3717_v32  ;;  %3880 = vmatprep.mubr.f32.mxu0 %v9331_v0 }
 0x12e   : > { %8847 = vmatprep.subr.msk.mxu0 %vm424_vm1, %v3720_v31 }
 0x130   : > { %8846 = vmatmul.mubr.msk.f32.vlgmr.msra.gmra.mrb[2].mxu0 %vm420_vm2, %v8840_v30 }
 0x131   : > { %8848 = vmatpush1.msk.msra.mxu0 %vm424_vm1, %v3719_v36  ;;  %3951 = vmatprep.mubr.f32.mxu0 %v9331_v0 }
 0x132   : > { %8850 = vmatprep.subr.msk.mxu0 %vm424_vm1, %v3722_v35 }
 0x134   : > { %8849 = vmatmul.mubr.msk.f32.vlgmr.msra.gmra.mrb[4].mxu0 %vm420_vm2, %v8840_v30 }
 0x135   : > { %8851 = vmatpush1.msk.msra.mxu0 %vm424_vm1, %v3721_v37  ;;  %4022 = vmatprep.mubr.f32.mxu0 %v9331_v0 }
 0x136   : > { %9074 = vmatprep.subr.mxu0 %v9331_v0 }
 0x138   : > { %8852 = vmatmul.mubr.msk.f32.vlgmr.msra.gmra.mrb[6].mxu0 %vm420_vm2, %v8840_v30 }
 0x139   : > { %9075 = vmatpush3.msk.msra.mxu0 %vm424_vm1, %v3723_v39  ;;  %9076 = vmatprep.mubr.msk.f32.mxu0 %vm9340_vm3, %v9331_v0  ;;  %v4140_v0 = vsub.s32 2, %v9906_v42  ;;  %vm4370_vm1 = vmor %vm4369_vm15, %vm4184_vm11  ;;  %vm4449_vm15 = vcmask 1045508  }
 0x13b   : > { %v9927_v54 = vrot.slane %v374_v44, %v4140_v0 }
 0x13c   : > { %9077 = vmatmul.mubr.msk.f32.vlgmr.msra.gmra.mrb[8].mxu0 %vm420_vm2, %v8840_v30  ;;  %vm4447_vm2 = vcmask 1041688  }
 0x1ff   : > { %v9920_v50 = vpop.f32.mrb[0].mxu0 }
 0x200   : > { %v4175_v52 = vmul.f32 %v9913_v46, %v9920_v50  ;;  %v9925_v53 = vpop.f32.mrb[1].mxu0 }
 0x201   : > { %v4176_v55 = vmul.f32 %v9916_v47, %v9925_v53 }
 0x202   : > { %v4185_v59 = vsel %vm4184_vm11, %v4175_v52, 0.0  ;;  %v4205_v60 = vmul.f32 %v4175_v52, %v4175_v52  ;;  %v4295_v61 = vsel %vm4294_vm12, %v4175_v52, 0.0 }
 0x203   : > { %v4186_v63 = vsel %vm4184_vm11, %v4176_v55, 0.0  ;;  %v4206_v1 = vmul.f32 %v4176_v55, %v4176_v55  ;;  %v4296_v2 = vsel %vm4294_vm12, %v4176_v55, 0.0  ;;  %v9941_v3 = vpop.f32.mrb[2].mxu0  ;;  %v9987_v55 = vld [vmem:[%s10724_s7 + $0x8] ss:$0 sm:$0xff] }
 0x204   : > { %v4214_v5 = vsel %vm4184_vm11, %v4205_v60, 0.0  ;;  %v4315_v6 = vsel %vm4294_vm12, %v4205_v60, 0.0  ;;  %v4187_v7 = vadd.f32 %v4186_v63, %v4185_v59  ;;  %v4297_v8 = vadd.f32 %v4296_v2, %v4295_v61  ;;  %v9947_v9 = vpop.f32.mrb[3].mxu0 }
 0x205   : > { %v4215_v10 = vsel %vm4184_vm11, %v4206_v1, 0.0  ;;  %v4316_v11 = vsel %vm4294_vm12, %v4206_v1, 0.0  ;;  %v4177_v12 = vmul.f32 %v9927_v54, %v9941_v3  ;;  %v4178_v13 = vmul.f32 %v9931_v56, %v9947_v9 }
 0x206   : > { %v4216_v14 = vadd.f32 %v4215_v10, %v4214_v5  ;;  %v4317_v15 = vadd.f32 %v4316_v11, %v4315_v6 }
 0x207   : > { %v4188_v18 = vsel %vm4184_vm11, %v4177_v12, 0.0  ;;  %v4207_v19 = vmul.f32 %v4177_v12, %v4177_v12  ;;  %v4298_v20 = vsel %vm4294_vm12, %v4177_v12, 0.0  ;;  %v4190_v21 = vsel %vm4184_vm11, %v4178_v13, 0.0  ;;  %v9962_v22 = vpop.f32.mrb[4].mxu0 }
 0x208   : > { %v4189_v23 = vadd.f32 %v4188_v18, %v4187_v7  ;;  %v4299_v24 = vadd.f32 %v4298_v20, %v4297_v8  ;;  %v4208_v25 = vmul.f32 %v4178_v13, %v4178_v13  ;;  %v4300_v26 = vsel %vm4294_vm12, %v4178_v13, 0.0  ;;  %v9965_v27 = vpop.f32.mrb[5].mxu0 }
 0x209   : > { %v4217_v28 = vsel %vm4184_vm11, %v4207_v19, 0.0  ;;  %v4318_v29 = vsel %vm4294_vm12, %v4207_v19, 0.0  ;;  %v4179_v30 = vmul.f32 %v9933_v57, %v9962_v22  ;;  %v4180_v31 = vmul.f32 %v9943_v4, %v9965_v27 }
 0x20a   : > { %v4218_v32 = vadd.f32 %v4217_v28, %v4216_v14  ;;  %v4319_v33 = vadd.f32 %v4318_v29, %v4317_v15  ;;  %v4191_v34 = vadd.f32 %v4190_v21, %v4189_v23  ;;  %v4219_v35 = vsel %vm4184_vm11, %v4208_v25, 0.0 }
 0x20b   : > { %v4301_v36 = vadd.f32 %v4300_v26, %v4299_v24  ;;  %v4320_v37 = vsel %vm4294_vm12, %v4208_v25, 0.0  ;;  %v4192_v38 = vsel %vm4184_vm11, %v4179_v30, 0.0  ;;  %v4209_v39 = vmul.f32 %v4179_v30, %v4179_v30  ;;  %v9976_v40 = vpop.f32.mrb[6].mxu0 }
 0x20c   : > { %v4220_v41 = vadd.f32 %v4219_v35, %v4218_v32  ;;  %v4321_v43 = vadd.f32 %v4320_v37, %v4319_v33  ;;  %v4193_v44 = vadd.f32 %v4192_v38, %v4191_v34  ;;  %v4302_v45 = vsel %vm4294_vm12, %v4179_v30, 0.0  ;;  %v9979_v0 = vpop.f32.mrb[7].mxu0 }
 0x20d   : > { %v4221_v48 = vsel %vm4184_vm11, %v4209_v39, 0.0  ;;  %v4303_v49 = vadd.f32 %v4302_v45, %v4301_v36  ;;  %v4322_v51 = vsel %vm4294_vm12, %v4209_v39, 0.0  ;;  %v4194_v52 = vsel %vm4184_vm11, %v4180_v31, 0.0 }
 0x20e   : > { %v4323_v58 = vadd.f32 %v4322_v51, %v4321_v43  ;;  %v4210_v59 = vmul.f32 %v4180_v31, %v4180_v31  ;;  %v4304_v60 = vsel %vm4294_vm12, %v4180_v31, 0.0  ;;  %v4181_v61 = vmul.f32 %v9955_v16, %v9976_v40 }
 0x20f   : > { %v4305_v62 = vadd.f32 %v4304_v60, %v4303_v49  ;;  %v4182_v63 = vmul.f32 %v9957_v17, %v9979_v0  ;;  %v9994_v1 = vpop.f32.mrb[8].mxu0  ;;  %v4195_v2 = vadd.f32 %v4194_v52, %v4193_v44  ;;  %v4222_v5 = vadd.f32 %v4221_v48, %v4220_v41  ;;  %v4127_v48 = vld [vmem:[%s360_s19] sm:$0x3] }
 0x210   : > { %v4324_v6 = vsel %vm4294_vm12, %v4210_v59, 0.0  ;;  %v4211_v7 = vmul.f32 %v4181_v61, %v4181_v61  ;;  %v4306_v8 = vsel %vm4294_vm12, %v4181_v61, 0.0  ;;  %v4183_v10 = vmul.f32 %v9987_v55, %v9994_v1  ;;  %v9078_v11 = vpop.f32.mrb[9].mxu0  ;;  %v4126_v49 = vld [vmem:[%s356_s23] sm:$0x3] }
 0x211   : > { %v4196_v12 = vsel %vm4184_vm11, %v4181_v61, 0.0  ;;  %v4198_v13 = vsel %vm4184_vm11, %v4182_v63, 0.0  ;;  %v4212_v14 = vmul.f32 %v4182_v63, %v4182_v63  ;;  %v4223_v15 = vsel %vm4184_vm11, %v4210_v59, 0.0 }
 0x212   : > { %v4197_v18 = vadd.f32 %v4196_v12, %v4195_v2  ;;  %v4201_v19 = vsel %vm10726_vm13, %v4183_v10, 0.0  ;;  %v4213_v20 = vmul.f32 %v4183_v10, %v4183_v10  ;;  %v4224_v21 = vadd.f32 %v4223_v15, %v4222_v5 }
 0x213   : > { %v4225_v23 = vsel %vm4184_vm11, %v4211_v7, 0.0  ;;  %v4227_v24 = vsel %vm4184_vm11, %v4212_v14, 0.0  ;;  %v4307_v25 = vadd.f32 %v4306_v8, %v4305_v62  ;;  %v4308_v26 = vsel %vm4294_vm12, %v4182_v63, 0.0 }
 0x214   : > { %v4199_v28 = vadd.f32 %v4198_v13, %v4197_v18  ;;  %v4226_v29 = vadd.f32 %v4225_v23, %v4224_v21  ;;  %v4311_v30 = vsel %vm4310_vm14, %v4183_v10, 0.0  ;;  %v4229_v31 = vsel %vm10726_vm13, %v4213_v20, 0.0 }
 0x215   : > { %v4309_v32 = vadd.f32 %v4308_v26, %v4307_v25  ;;  %v4325_v33 = vadd.f32 %v4324_v6, %v4323_v58  ;;  %v4326_v34 = vsel %vm4294_vm12, %v4211_v7, 0.0  ;;  %v4328_v37 = vsel %vm4294_vm12, %v4212_v14, 0.0 }
 0x216   : > { %v4202_v35 = vadd.f32 %v4201_v19, %v4199_v28  ;;  %v4228_v36 = vadd.f32 %v4227_v24, %v4226_v29  ;;  %v4330_v43 = vsel %vm4310_vm14, %v4213_v20, 0.0  ;;  %v9342_v63 = vmov 1983009808   ;;  %vm4448_vm14 = vmor %vm4294_vm12, %vm4447_vm2 }
 0x217   : > { %v10011_v38 = vadd.f32 %v4311_v30, %v4309_v32  ;;  %v4327_v39 = vadd.f32 %v4326_v34, %v4325_v33  ;;  %v4393_v2 = vunpack.c.l.s4 %v9342_v63  ;;  %vm4450_vm13 = vmor %vm4449_vm15, %vm4448_vm14  ;;  %vm10739_vm2 = vcmask 490496  }
 0x218   : > { %4203 = vadd.xlane.f32.xlu1 %v4202_v35  ;;  %v4230_v41 = vadd.f32 %v4229_v31, %v4228_v36  ;;  %vm10740_vm14 = vmmov %vm10739_vm2 }
 0x219   : > { %v4329_v44 = vadd.f32 %v4328_v37, %v4327_v39  ;;  %v4394_v5 = vunpack.c.0.s8 %v4393_v2  ;;  %vm10741_vm15 = vmmov %vm10739_vm2 }
 0x21a   : > { %4231 = vadd.xlane.f32.xlu0 %v4230_v41 }
 0x21b   : > { %v10014_v45 = vadd.f32 %v4330_v43, %v4329_v44 }
 0x229   : > { %4273 = vperm.xlu1 %9308, %v4127_v48  }
 0x230   : > { %4259 = vperm.xlu0 %9307, %v4126_v49  }
 0x2a5   : > { %v4204_v51 = vpop.xlane.xlu1 %4203 }
 0x2a6   : > { %v10027_v52 = vmul.f32 0.0009765625, %v4204_v51 }
 0x2a7   : > { %v4232_v58 = vpop.xlane.xlu0 %4231 }
 0x2a8   : > { %v4234_v59 = vmul.f32 0.0009765625, %v4232_v58  ;;  %v4235_v60 = vmul.f32 %v10027_v52, %v10027_v52  ;;  %v4237_v6 = vsub.f32 %v9920_v50, %v10027_v52  ;;  %v4238_v7 = vsub.f32 %v9925_v53, %v10027_v52 }
 0x2a9   : > { %v4239_v8 = vsub.f32 %v9941_v3, %v10027_v52  ;;  %v4240_v10 = vsub.f32 %v9947_v9, %v10027_v52  ;;  %v4241_v11 = vsub.f32 %v9962_v22, %v10027_v52  ;;  %v4242_v14 = vsub.f32 %v9965_v27, %v10027_v52  ;;  %v4274_v25 = vpop.permute.xlu1 %4273 }
 0x2aa   : > { %v4236_v61 = vsub.f32 %v4234_v59, %v4235_v60  ;;  %v4243_v15 = vsub.f32 %v9976_v40, %v10027_v52  ;;  %v4244_v18 = vsub.f32 %v9979_v0, %v10027_v52  ;;  %v4245_v19 = vsub.f32 %v9994_v1, %v10027_v52 }
 0x2ac   : > { %v4246_v62 = vadd.f32 1e-05, %v4236_v61 }
 0x2ae   : > { %9315 = vrsqrt.f32 %v4246_v62 }
 0x2af   : > { %v4260_v13 = vpop.permute.xlu0 %4259 }
 0x2b8   : > { %v9316_v12 = vpop.eup %9315 }
 0x2b9   : > { %v4248_v20 = vmul.f32 %v9316_v12, %v4237_v6  ;;  %v4249_v21 = vmul.f32 %v9316_v12, %v4238_v7  ;;  %v4250_v23 = vmul.f32 %v9316_v12, %v4239_v8  ;;  %v4251_v24 = vmul.f32 %v9316_v12, %v4240_v10 }
 0x2ba   : > { %v4252_v26 = vmul.f32 %v9316_v12, %v4241_v11  ;;  %v4253_v28 = vmul.f32 %v9316_v12, %v4242_v14  ;;  %v4254_v29 = vmul.f32 %v9316_v12, %v4243_v15  ;;  %v4255_v30 = vmul.f32 %v9316_v12, %v4244_v18 }
 0x2bb   : > { %v4262_v31 = vmul.f32 %v4260_v13, %v4248_v20  ;;  %v4263_v32 = vmul.f32 %v4260_v13, %v4249_v21  ;;  %v4264_v33 = vmul.f32 %v4260_v13, %v4250_v23  ;;  %v4265_v34 = vmul.f32 %v4260_v13, %v4251_v24 }
 0x2bc   : > { %v4266_v35 = vmul.f32 %v4260_v13, %v4252_v26  ;;  %v4267_v36 = vmul.f32 %v4260_v13, %v4253_v28  ;;  %v4268_v37 = vmul.f32 %v4260_v13, %v4254_v29  ;;  %v4269_v39 = vmul.f32 %v4260_v13, %v4255_v30 }
 0x2bd   : > { %v4276_v41 = vadd.f32 %v4274_v25, %v4262_v31  ;;  %v4277_v43 = vadd.f32 %v4274_v25, %v4263_v32  ;;  %v4278_v44 = vadd.f32 %v4274_v25, %v4264_v33  ;;  %v4279_v48 = vadd.f32 %v4274_v25, %v4265_v34 }
 0x2be   : > { %v4280_v49 = vadd.f32 %v4274_v25, %v4266_v35  ;;  %v4281_v51 = vadd.f32 %v4274_v25, %v4267_v36  ;;  %v4282_v52 = vadd.f32 %v4274_v25, %v4268_v37  ;;  %v4283_v58 = vadd.f32 %v4274_v25, %v4269_v39  ;;  %v10065_v36 = vld [vmem:[#allocation2] sm:$0xff] }
 0x2bf   : > { %v4285_v59 = vmax.f32 %v4276_v41, 0.0  ;;  %v4286_v60 = vmax.f32 %v4277_v43, 0.0  ;;  %v4287_v61 = vmax.f32 %v4278_v44, 0.0  ;;  %v4288_v62 = vmax.f32 %v4279_v48, 0.0  ;;  %4371 = vst.msk [vmem:[#allocation2 + $0x10] sm:$0xf] %vm4370_vm1, %v10065_v36  ;;  %vm4452_vm1 = vmor %vm4451_vm10, %vm4450_vm13 }
 0x2c0   : > { %v4289_v63 = vmax.f32 %v4280_v49, 0.0  ;;  %v4290_v2 = vmax.f32 %v4281_v51, 0.0  ;;  %v4291_v6 = vmax.f32 %v4282_v52, 0.0  ;;  %v4292_v7 = vmax.f32 %v4283_v58, 0.0 }
 0x2c1   : > { %v4372_v8 = vmul.f32 %v4285_v59, %v9913_v46  ;;  %v4373_v10 = vmul.f32 %v4286_v60, %v9916_v47  ;;  %v4374_v11 = vmul.f32 %v4287_v61, %v9927_v54  ;;  %v4375_v14 = vmul.f32 %v4288_v62, %v9931_v56 }
 0x2c2   : > { %v4376_v15 = vmul.f32 %v4289_v63, %v9933_v57  ;;  %v4377_v18 = vmul.f32 %v4290_v2, %v9943_v4  ;;  %v4378_v20 = vmul.f32 %v4291_v6, %v9955_v16  ;;  %v4379_v21 = vmul.f32 %v4292_v7, %v9957_v17 }
 0x2c3   : > { %v10058_v23 = vsub.s32 %v4394_v5, %v9906_v42  ;;  %v4390_v24 = vcombine.low %v4372_v8, %v4373_v10  ;;  %v4391_v26 = vcombine.low %v4374_v11, %v4375_v14  ;;  %v4256_v28 = vmul.f32 %v9316_v12, %v4245_v19 }
 0x2c4   : > { %v4407_v29 = vcombine.low %v4376_v15, %v4377_v18  ;;  %v4408_v30 = vcombine.low %v4378_v20, %v4379_v21 }
 0x2c5   : > { %v4398_v31 = vrot.slane %v4390_v24, %v10058_v23  ;;  %v4405_v32 = vrot.slane %v4391_v26, %v10058_v23  ;;  %v4270_v33 = vmul.f32 %v4260_v13, %v4256_v28 }
 0x2c6   : > { %v4415_v34 = vrot.slane %v4407_v29, %v10058_v23  ;;  %v4422_v35 = vrot.slane %v4408_v30, %v10058_v23  ;;  %v8856_v29 = vld [vmem:[%s10719_s2 + $0x2] sm:$0x3] }
 0x2c7   : > { %v4406_v42 = vcombine.low %v4398_v31, %v4405_v32  ;;  %v4284_v5 = vadd.f32 %v4274_v25, %v4270_v33 }
 0x2c8   : > { %v4423_v12 = vcombine.low %v4415_v34, %v4422_v35 }
 0x2c9   : > { %4431 = vrot.lane.b32.xlu1 %v4406_v42, %s9343_s24  ;;  %v4293_v19 = vmax.f32 %v4284_v5, 0.0 }
 0x2cb   : > { %v4380_v37 = vmul.f32 %v9987_v55, %v4293_v19 }
 0x2cd   : > { %4433 = vrot.lane.b32.xlu1 %v4423_v12, %s9343_s24  ;;  %v4430_v13 = vrot.slane %v4380_v37, %v10058_v23 }
 0x2d1   : > { %4435 = vrot.lane.b32.xlu1 %v4430_v13, %s9343_s24 }
 0x33b   : > { %v4432_v39 = vpop.permute.xlu1 %4431 }
 0x33c   : > { %v4437_v25 = vrot.slane %v4432_v39, 6 }
 0x33e   : > { %v4440_v41 = vsel %vm4439_vm9, %v4437_v25, %v4432_v39 }
 0x33f   : > { %4453 = vst.msk [vmem:[#allocation2] sm:$0xff] %vm4452_vm1, %v4440_v41  ;;  %v4434_v43 = vpop.permute.xlu1 %4433  ;;  %vm10742_vm1 = vmmov %vm10739_vm2 }
 0x340   : > { %v4438_v44 = vrot.slane %v4434_v43, 6 }
 0x342   : > { %v4441_v55 = vsel %vm4184_vm11, %v4437_v25, %v4438_v44 }
 0x343   : > { %v4442_v48 = vsel %vm4439_vm9, %v4441_v55, %v4434_v43  ;;  %v4436_v49 = vpop.permute.xlu1 %4435  ;;  %v4460_v55 = vld [vmem:[%s10719_s2] sm:$0x3] }
 0x344   : > { %v4443_v51 = vsel %vm4439_vm9, %v4438_v44, %v4436_v49  ;;  %v10073_v52 = vrot.slane %v4442_v48, %v10058_v23  ;;  %v4483_v58 = vcombine.high %v4442_v48, %v4442_v48 }
 0x345   : > { %4456 = vst.msk [vmem:[#allocation2 + $0x10] sm:$0x3] %vm4455_vm8, %v4443_v51  ;;  %vm4533_vm8 = vcmask 15360  }
 0x346   : > { %v4457_v59 = vld [vmem:[#allocation2] sm:$0xff]  ;;  %4515 = vrot.lane.b32.xlu0 %v10073_v52, %s9332_s11  ;;  %v10081_v61 = vrot.slane %v4483_v58, %v10058_v23  ;;  %v10114_v8 = vcombine.high %v10073_v52, %v10073_v52 }
 0x347   : > { %v10078_v60 = vrot.slane %v4457_v59, %v10058_v23  ;;  %v4466_v63 = vcombine.high %v4457_v59, %v4457_v59 }
 0x348   : > { %v10122_v10 = vcombine.high %v10081_v61, %v10081_v61 }
 0x349   : > { %4507 = vrot.lane.b32.xlu1 %v10078_v60, %s9332_s11  ;;  %v10089_v62 = vcombine.high %v10078_v60, %v10078_v60  ;;  %v10098_v6 = vrot.slane %v4466_v63, %v10058_v23 }
 0x34a   : > { %4519 = vrot.lane.b32.xlu0 %v10081_v61, %s9332_s11 }
 0x34b   : > { %v10106_v7 = vcombine.high %v10098_v6, %v10098_v6 }
 0x34c   : > { %v10091_v2 = vld.sshfl [vmem:[#allocation2 + $0x10] sm:$0x3 pattern:$0x76325410] }
 0x34d   : > { %4509 = vrot.lane.b32.xlu1 %v10089_v62, %s9332_s11  ;;  %v10198_v11 = vld.sshfl [vmem:[#allocation2 + $0x10] sm:$0x33 pattern:$0x76325410] }
 0x34e   : > { %4523 = vrot.lane.b32.xlu0 %v10091_v2, %s9332_s11  ;;  %v7106_v14 = vcombine.high %v10198_v11, %v10198_v11 }
 0x351   : > { %4511 = vrot.lane.b32.xlu1 %v10098_v6, %s9332_s11 }
 0x352   : > { %5337 = vrot.lane.b32.xlu0 %v10098_v6, %s9333_s12 }
 0x355   : > { %4513 = vrot.lane.b32.xlu1 %v10106_v7, %s9332_s11 }
 0x356   : > { %5339 = vrot.lane.b32.xlu0 %v10106_v7, %s9333_s12 }
 0x359   : > { %4517 = vrot.lane.b32.xlu1 %v10114_v8, %s9332_s11 }
 0x35a   : > { %5343 = vrot.lane.b32.xlu0 %v10114_v8, %s9333_s12 }
 0x35d   : > { %4521 = vrot.lane.b32.xlu1 %v10122_v10, %s9332_s11 }
 0x35e   : > { %5347 = vrot.lane.b32.xlu0 %v10122_v10, %s9333_s12 }
 0x361   : > { %5335 = vrot.lane.b32.xlu1 %v10089_v62, %s9333_s12 }
 0x362   : > { %5796 = vrot.lane.b32.xlu0 %v10089_v62, %s9334_s13 }
 0x365   : > { %5333 = vrot.lane.b32.xlu1 %v10078_v60, %s9333_s12 }
 0x366   : > { %5794 = vrot.lane.b32.xlu0 %v10078_v60, %s9334_s13 }
 0x369   : > { %5341 = vrot.lane.b32.xlu1 %v10073_v52, %s9333_s12 }
 0x36a   : > { %5802 = vrot.lane.b32.xlu0 %v10073_v52, %s9334_s13 }
 0x36d   : > { %5345 = vrot.lane.b32.xlu1 %v10081_v61, %s9333_s12 }
 0x36e   : > { %5806 = vrot.lane.b32.xlu0 %v10081_v61, %s9334_s13 }
 0x371   : > { %5349 = vrot.lane.b32.xlu1 %v10091_v2, %s9333_s12 }
 0x372   : > { %5810 = vrot.lane.b32.xlu0 %v10091_v2, %s9334_s13 }
 0x375   : > { %5798 = vrot.lane.b32.xlu1 %v10098_v6, %s9334_s13 }
 0x376   : > { %6199 = vrot.lane.b32.xlu0 %v10098_v6, %s9335_s14 }
 0x379   : > { %5800 = vrot.lane.b32.xlu1 %v10106_v7, %s9334_s13 }
 0x37a   : > { %6201 = vrot.lane.b32.xlu0 %v10106_v7, %s9335_s14 }
 0x37d   : > { %5804 = vrot.lane.b32.xlu1 %v10114_v8, %s9334_s13 }
 0x37e   : > { %6205 = vrot.lane.b32.xlu0 %v10114_v8, %s9335_s14 }
 0x381   : > { %5808 = vrot.lane.b32.xlu1 %v10122_v10, %s9334_s13 }
 0x382   : > { %6209 = vrot.lane.b32.xlu0 %v10122_v10, %s9335_s14 }
 0x385   : > { %6197 = vrot.lane.b32.xlu1 %v10089_v62, %s9335_s14 }
 0x386   : > { %6647 = vrot.lane.b32.xlu0 %v10089_v62, %s9336_s15 }
 0x389   : > { %6195 = vrot.lane.b32.xlu1 %v10078_v60, %s9335_s14 }
 0x38a   : > { %6645 = vrot.lane.b32.xlu0 %v10078_v60, %s9336_s15 }
 0x38d   : > { %6203 = vrot.lane.b32.xlu1 %v10073_v52, %s9335_s14 }
 0x38e   : > { %6653 = vrot.lane.b32.xlu0 %v10073_v52, %s9336_s15 }
 0x391   : > { %6207 = vrot.lane.b32.xlu1 %v10081_v61, %s9335_s14 }
 0x392   : > { %6657 = vrot.lane.b32.xlu0 %v10081_v61, %s9336_s15 }
 0x395   : > { %6211 = vrot.lane.b32.xlu1 %v10091_v2, %s9335_s14  ;;  %s368_s14 = scalar_lea.vmem %s10723_s6, %s10017_s9 }
 0x396   : > { %6661 = vrot.lane.b32.xlu0 %v10091_v2, %s9336_s15 }
 0x399   : > { %6649 = vrot.lane.b32.xlu1 %v10098_v6, %s9336_s15 }
 0x39a   : > { %7111 = vrot.lane.b32.xlu0 %v10098_v6, %s9337_s16 }
 0x39d   : > { %6651 = vrot.lane.b32.xlu1 %v10106_v7, %s9336_s15 }
 0x39e   : > { %7113 = vrot.lane.b32.xlu0 %v10106_v7, %s9337_s16 }
 0x3a1   : > { %6655 = vrot.lane.b32.xlu1 %v10114_v8, %s9336_s15 }
 0x3a2   : > { %7117 = vrot.lane.b32.xlu0 %v10114_v8, %s9337_s16 }
 0x3a5   : > { %6659 = vrot.lane.b32.xlu1 %v10122_v10, %s9336_s15 }
 0x3a6   : > { %7121 = vrot.lane.b32.xlu0 %v10122_v10, %s9337_s16 }
 0x3a9   : > { %7109 = vrot.lane.b32.xlu1 %v10089_v62, %s9337_s16 }
 0x3aa   : > { %7125 = vrot.lane.b32.xlu0 %v7106_v14, %s9337_s16 }
 0x3ad   : > { %7107 = vrot.lane.b32.xlu1 %v10078_v60, %s9337_s16 }
 0x3ae   : > { %7515 = vrot.lane.b32.xlu0 %v10098_v6, %s9338_s17 }
 0x3b1   : > { %7115 = vrot.lane.b32.xlu1 %v10073_v52, %s9337_s16 }
 0x3b2   : > { %7517 = vrot.lane.b32.xlu0 %v10106_v7, %s9338_s17 }
 0x3b5   : > { %7119 = vrot.lane.b32.xlu1 %v10081_v61, %s9337_s16 }
 0x3b6   : > { %7521 = vrot.lane.b32.xlu0 %v10114_v8, %s9338_s17 }
 0x3b8   : > { %v4516_v15 = vpop.permute.xlu0 %4515 }
 0x3b9   : > { %7123 = vrot.lane.b32.xlu1 %v10198_v11, %s9337_s16 }
 0x3ba   : > { %7525 = vrot.lane.b32.xlu0 %v10122_v10, %s9338_s17 }
 0x3bb   : > { %v4508_v18 = vpop.permute.xlu1 %4507 }
 0x3bc   : > { %v4520_v20 = vpop.permute.xlu0 %4519 }
 0x3bd   : > { %7513 = vrot.lane.b32.xlu1 %v10089_v62, %s9338_s17 }
 0x3be   : > { %7529 = vrot.lane.b32.xlu0 %v7106_v14, %s9338_s17 }
 0x3bf   : > { %v4510_v21 = vpop.permute.xlu1 %4509 }
 0x3c0   : > { %v4524_v24 = vpop.permute.xlu0 %4523  ;;  %v4525_v31 = vsel %vm411_vm0, %v4508_v18, %v4510_v21 }
 0x3c1   : > { %7511 = vrot.lane.b32.xlu1 %v10078_v60, %s9338_s17 }
 0x3c2   : > { %7969 = vrot.lane.b32.xlu0 %v10098_v6, %s9339_s20 }
 0x3c3   : > { %v4512_v26 = vpop.permute.xlu1 %4511 }
 0x3c4   : > { %v4526_v28 = vsel %vm411_vm0, %v4510_v21, %v4512_v26  ;;  %v10234_v30 = vpop.permute.xlu0 %5337 }
 0x3c5   : > { %7519 = vrot.lane.b32.xlu1 %v10073_v52, %s9338_s17  ;;  %8858 = vmatprep.subr.msk.mxu1 %vm4184_vm11, %v4526_v28 }
 0x3c6   : > { %8859 = vmatpush1.msk.msra.mxu1 %vm4184_vm11, %v4525_v31  ;;  %7971 = vrot.lane.b32.xlu0 %v10106_v7, %s9339_s20 }
 0x3c7   : > { %8860 = vmatmul.mubr.msk.f32.vlgmr.msra.gmra.mrb[0].mxu1 %vm4533_vm8, %v8856_v29  ;;  %v4514_v32 = vpop.permute.xlu1 %4513 }
 0x3c8   : > { %v4527_v33 = vsel %vm411_vm0, %v4512_v26, %v4514_v32  ;;  %v4528_v34 = vsel %vm411_vm0, %v4514_v32, %v4516_v15  ;;  %4690 = vmatprep.mubr.f32.mxu1 %v10065_v36  ;;  %v10247_v35 = vpop.permute.xlu0 %5339 }
 0x3c9   : > { %7523 = vrot.lane.b32.xlu1 %v10081_v61, %s9338_s17  ;;  %8861 = vmatprep.subr.msk.mxu1 %vm4184_vm11, %v4528_v34 }
 0x3ca   : > { %8862 = vmatpush1.msk.msra.mxu1 %vm4184_vm11, %v4527_v33  ;;  %7975 = vrot.lane.b32.xlu0 %v10114_v8, %s9339_s20 }
 0x3cb   : > { %8863 = vmatmul.mubr.msk.f32.vlgmr.msra.gmra.mrb[2].mxu1 %vm4533_vm8, %v8856_v29  ;;  %v4518_v42 = vpop.permute.xlu1 %4517 }
 0x3cc   : > { %v4529_v5 = vsel %vm411_vm0, %v4516_v15, %v4518_v42  ;;  %v4530_v12 = vsel %vm411_vm0, %v4518_v42, %v4520_v20  ;;  %4761 = vmatprep.mubr.f32.mxu1 %v10065_v36  ;;  %v10259_v19 = vpop.permute.xlu0 %5343 }
 0x3cd   : > { %7527 = vrot.lane.b32.xlu1 %v10198_v11, %s9338_s17  ;;  %8864 = vmatprep.subr.msk.mxu1 %vm4184_vm11, %v4530_v12  ;;  %s364_s17 = scalar_lea.vmem %s10722_s5, %s10017_s9  ;;  %s9285_s9 = smul.u32 18, %s10761_s28 }
 0x3ce   : > { %8865 = vmatpush1.msk.msra.mxu1 %vm4184_vm11, %v4529_v5  ;;  %7979 = vrot.lane.b32.xlu0 %v10122_v10, %s9339_s20 }
 0x3cf   : > { %8866 = vmatmul.mubr.msk.f32.vlgmr.msra.gmra.mrb[4].mxu1 %vm4533_vm8, %v8856_v29  ;;  %v4522_v37 = vpop.permute.xlu1 %4521  ;;  %s373_s26 = scalar_lea.vmem %s10725_s8, %s9285_s9 }
 0x3d0   : > { %v4531_v13 = vsel %vm411_vm0, %v4520_v20, %v4522_v37  ;;  %v4532_v39 = vsel %vm411_vm0, %v4522_v37, %v4524_v24  ;;  %4832 = vmatprep.mubr.f32.mxu1 %v10065_v36  ;;  %v10271_v25 = vpop.permute.xlu0 %5347  ;;  %vm10730_vm0 = vcmask 482304  }
 0x3d1   : > { %7967 = vrot.lane.b32.xlu1 %v10089_v62, %s9339_s20  ;;  %8867 = vmatprep.subr.msk.mxu1 %vm4184_vm11, %v4532_v39  ;;  %vm10735_vm9 = vmmov %vm10730_vm0 }
 0x3d2   : > { %8868 = vmatpush1.msk.msra.mxu1 %vm4184_vm11, %v4531_v13  ;;  %7983 = vrot.lane.b32.xlu0 %v7106_v14, %s9339_s20  ;;  %vm10736_vm10 = vmmov %vm10730_vm0 }
 0x3d3   : > { %8869 = vmatmul.mubr.msk.f32.vlgmr.msra.gmra.mrb[6].mxu1 %vm4533_vm8, %v8856_v29  ;;  %9079 = vmatprep.subr.mxu1 %v10065_v36  ;;  %v5336_v41 = vpop.permute.xlu1 %5335  ;;  %vm10737_vm12 = vmmov %vm10730_vm0 }
 0x3d4   : > { %9080 = vmatpush3.msk.msra.mxu1 %vm4184_vm11, %v4524_v24  ;;  %9081 = vmatprep.mubr.msk.f32.mxu1 %vm9340_vm3, %v10065_v36  ;;  %v10283_v43 = vpop.permute.xlu0 %5796  ;;  %v5352_v63 = vsel %vm1206_vm4, %v5336_v41, %v10234_v30  ;;  %vm10738_vm13 = vmmov %vm10730_vm0 }
 0x3d5   : > { %7965 = vrot.lane.b32.xlu1 %v10078_v60, %s9339_s20  ;;  %8872 = vmatprep.subr.msk.mxu1 %vm4184_vm11, %v10089_v62 }
 0x3d7   : > { %9082 = vmatmul.mubr.msk.f32.vlgmr.msra.gmra.mrb[8].mxu1 %vm4533_vm8, %v8856_v29  ;;  %v5334_v44 = vpop.permute.xlu1 %5333 }
 0x3d8   : > { %8873 = vmatpush1.msk.msra.mxu1 %vm4184_vm11, %v10078_v60  ;;  %4994 = vmatprep.mubr.f32.mxu1 %v10065_v36  ;;  %v10296_v48 = vpop.permute.xlu0 %5794 }
 0x3d9   : > { %8875 = vmatprep.subr.msk.mxu1 %vm4184_vm11, %v10106_v7  ;;  %7973 = vrot.lane.b32.xlu1 %v10073_v52, %s9339_s20  ;;  %v5812_v31 = vsel %vm1635_vm5, %v10296_v48, %v10283_v43 }
 0x3db   : > { %8874 = vmatmul.mubr.msk.f32.vlgmr.msra.gmra.mrb[0].mxu1 %vm4533_vm8, %v4460_v55  ;;  %v5342_v49 = vpop.permute.xlu1 %5341 }
 0x3dc   : > { %8876 = vmatpush1.msk.msra.mxu1 %vm4184_vm11, %v10098_v6  ;;  %5065 = vmatprep.mubr.f32.mxu1 %v10065_v36  ;;  %v10306_v51 = vpop.permute.xlu0 %5802  ;;  %v5355_v18 = vsel %vm1206_vm4, %v5342_v49, %v10259_v19 }
 0x3dd   : > { %8878 = vmatprep.subr.msk.mxu1 %vm4184_vm11, %v10114_v8  ;;  %7977 = vrot.lane.b32.xlu1 %v10081_v61, %s9339_s20  ;;  %v5354_v8 = vsel %vm1206_vm4, %v10247_v35, %v5342_v49 }
 0x3df   : > { %8877 = vmatmul.mubr.msk.f32.vlgmr.msra.gmra.mrb[2].mxu1 %vm4533_vm8, %v4460_v55  ;;  %v5346_v58 = vpop.permute.xlu1 %5345 }
 0x3e0   : > { %8879 = vmatpush1.msk.msra.mxu1 %vm4184_vm11, %v10073_v52  ;;  %5136 = vmatprep.mubr.f32.mxu1 %v10065_v36  ;;  %v10316_v59 = vpop.permute.xlu0 %5806  ;;  %v5356_v15 = vsel %vm1206_vm4, %v10259_v19, %v5346_v58 }
 0x3e1   : > { %8881 = vmatprep.subr.msk.mxu1 %vm4184_vm11, %v10122_v10  ;;  %7981 = vrot.lane.b32.xlu1 %v10198_v11, %s9339_s20  ;;  %v5353_v11 = vsel %vm1206_vm4, %v10234_v30, %v10247_v35  ;;  %v8903_v35 = vld [vmem:[%s10719_s2 + $0x8] sm:$0x3] }
 0x3e3   : > { %8880 = vmatmul.mubr.msk.f32.vlgmr.msra.gmra.mrb[4].mxu1 %vm4533_vm8, %v4460_v55  ;;  %v5350_v60 = vpop.permute.xlu1 %5349 }
 0x3e4   : > { %8882 = vmatpush1.msk.msra.mxu1 %vm4184_vm11, %v10081_v61  ;;  %5207 = vmatprep.mubr.f32.mxu1 %v10065_v36  ;;  %v10326_v62 = vpop.permute.xlu0 %5810  ;;  %v5351_v61 = vsel %vm1206_vm4, %v5334_v44, %v5336_v41  ;;  %v5358_v24 = vsel %vm1206_vm4, %v10271_v25, %v5350_v60 }
 0x3e5   : > { %9084 = vmatprep.subr.mxu1 %v10065_v36 }
 0x3e7   : > { %8883 = vmatmul.mubr.msk.f32.vlgmr.msra.gmra.mrb[6].mxu1 %vm4533_vm8, %v4460_v55  ;;  %v5799_v52 = vpop.permute.xlu1 %5798 }
 0x3e8   : > { %9085 = vmatpush3.msk.msra.mxu1 %vm4184_vm11, %v10091_v2  ;;  %9086 = vmatprep.mubr.msk.f32.mxu1 %vm9340_vm3, %v10065_v36  ;;  %v10336_v6 = vpop.permute.xlu0 %6199  ;;  %v8886_v2 = vld [vmem:[%s10719_s2 + $0x4] sm:$0x3]  ;;  %v5813_v30 = vsel %vm1635_vm5, %v10283_v43, %v5799_v52 }
 0x3e9   : > { %8888 = vmatprep.subr.msk.mxu1 %vm4184_vm11, %v5352_v63 }
 0x3eb   : > { %9087 = vmatmul.mubr.msk.f32.vlgmr.msra.gmra.mrb[8].mxu1 %vm4533_vm8, %v4460_v55  ;;  %v5801_v7 = vpop.permute.xlu1 %5800 }
 0x3ec   : > { %8889 = vmatpush1.msk.msra.mxu1 %vm4184_vm11, %v5351_v61  ;;  %5444 = vmatprep.mubr.f32.mxu1 %v10065_v36  ;;  %v10349_v10 = vpop.permute.xlu0 %6201  ;;  %v5815_v34 = vsel %vm1635_vm5, %v5801_v7, %v10306_v51  ;;  %v5814_v42 = vsel %vm1635_vm5, %v5799_v52, %v5801_v7 }
 0x3ed   : > { %8891 = vmatprep.subr.msk.mxu1 %vm4184_vm11, %v5354_v8 }
 0x3ef   : > { %8890 = vmatmul.mubr.msk.f32.vlgmr.msra.gmra.mrb[0].mxu1 %vm4533_vm8, %v8886_v2  ;;  %v5805_v14 = vpop.permute.xlu1 %5804 }
 0x3f0   : > { %8892 = vmatpush1.msk.msra.mxu1 %vm4184_vm11, %v5353_v11  ;;  %5515 = vmatprep.mubr.f32.mxu1 %v10065_v36  ;;  %v10364_v21 = vpop.permute.xlu0 %6205  ;;  %v5817_v12 = vsel %vm1635_vm5, %v5805_v14, %v10316_v59  ;;  %v5816_v37 = vsel %vm1635_vm5, %v10306_v51, %v5805_v14 }
 0x3f1   : > { %8894 = vmatprep.subr.msk.mxu1 %vm4184_vm11, %v5356_v15  ;;  %4313 = vadd.xlane.f32.xlu0 %v10011_v38  ;;  %v5357_v38 = vsel %vm1206_vm4, %v5346_v58, %v10271_v25  ;;  %v8902_v58 = vld [vmem:[%s10719_s2 + $0x6] sm:$0x3]  ;;  %vm10731_vm4 = vmmov %vm10730_vm0 }
 0x3f3   : > { %8893 = vmatmul.mubr.msk.f32.vlgmr.msra.gmra.mrb[2].mxu1 %vm4533_vm8, %v8886_v2  ;;  %v5809_v20 = vpop.permute.xlu1 %5808 }
 0x3f4   : > { %8895 = vmatpush1.msk.msra.mxu1 %vm4184_vm11, %v5355_v18  ;;  %5586 = vmatprep.mubr.f32.mxu1 %v10065_v36  ;;  %v10377_v28 = vpop.permute.xlu0 %6209  ;;  %v5819_v39 = vsel %vm1635_vm5, %v5809_v20, %v10326_v62  ;;  %v5818_v25 = vsel %vm1635_vm5, %v10316_v59, %v5809_v20  ;;  %v6215_v59 = vsel %vm2037_vm6, %v10336_v6, %v10349_v10  ;;  %vm10732_vm5 = vmmov %vm10730_vm0 }
 0x3f5   : > { %8897 = vmatprep.subr.msk.mxu1 %vm4184_vm11, %v5358_v24 }
 0x3f7   : > { %8896 = vmatmul.mubr.msk.f32.vlgmr.msra.gmra.mrb[4].mxu1 %vm4533_vm8, %v8886_v2  ;;  %v6198_v26 = vpop.permute.xlu1 %6197 }
 0x3f8   : > { %8898 = vmatpush1.msk.msra.mxu1 %vm4184_vm11, %v5357_v38  ;;  %5657 = vmatprep.mubr.f32.mxu1 %v10065_v36  ;;  %v10390_v33 = vpop.permute.xlu0 %6647  ;;  %v6214_v44 = vsel %vm2037_vm6, %v6198_v26, %v10336_v6 }
 0x3f9   : > { %9089 = vmatprep.subr.mxu1 %v10065_v36 }
 0x3fb   : > { %8899 = vmatmul.mubr.msk.f32.vlgmr.msra.gmra.mrb[6].mxu1 %vm4533_vm8, %v8886_v2  ;;  %v6196_v29 = vpop.permute.xlu1 %6195 }
 0x3fc   : > { %9090 = vmatpush3.msk.msra.mxu1 %vm4184_vm11, %v5350_v60  ;;  %9091 = vmatprep.mubr.msk.f32.mxu1 %vm9340_vm3, %v10065_v36  ;;  %v6646_v19 = vpop.permute.xlu0 %6645  ;;  %v6213_v48 = vsel %vm2037_vm6, %v6196_v29, %v6198_v26 }
 0x3fd   : > { %8905 = vmatprep.subr.msk.mxu1 %vm4184_vm11, %v5813_v30  ;;  %v6663_v15 = vsel %vm2455_vm7, %v6646_v19, %v10390_v33 }
 0x3ff   : > { %9092 = vmatmul.mubr.msk.f32.vlgmr.msra.gmra.mrb[8].mxu1 %vm4533_vm8, %v8886_v2  ;;  %v6204_v32 = vpop.permute.xlu1 %6203 }
 0x400   : > { %8906 = vmatpush1.msk.msra.mxu1 %vm4184_vm11, %v5812_v31  ;;  %5905 = vmatprep.mubr.f32.mxu1 %v10065_v36  ;;  %v10418_v41 = vpop.permute.xlu0 %6653  ;;  %v6216_v51 = vsel %vm2037_vm6, %v10349_v10, %v6204_v32  ;;  %v6217_v63 = vsel %vm2037_vm6, %v6204_v32, %v10364_v21 }
 0x401   : > { %8908 = vmatprep.subr.msk.mxu1 %vm4184_vm11, %v5815_v34 }
 0x403   : > { %8907 = vmatmul.mubr.msk.f32.vlgmr.msra.gmra.mrb[0].mxu1 %vm4533_vm8, %v8903_v35  ;;  %v6208_v5 = vpop.permute.xlu1 %6207 }
 0x404   : > { %8909 = vmatpush1.msk.msra.mxu1 %vm4184_vm11, %v5814_v42  ;;  %5976 = vmatprep.mubr.f32.mxu1 %v10065_v36  ;;  %v10431_v55 = vpop.permute.xlu0 %6657  ;;  %v6218_v52 = vsel %vm2037_vm6, %v10364_v21, %v6208_v5  ;;  %v6219_v8 = vsel %vm2037_vm6, %v6208_v5, %v10377_v28  ;;  %v8933_v21 = vld [vmem:[%s10719_s2 + $0xa] sm:$0x3] }
 0x405   : > { %8911 = vmatprep.subr.msk.mxu1 %vm4184_vm11, %v5817_v12  ;;  %4332 = vadd.xlane.f32.xlu1 %v10014_v45 }
 0x407   : > { %8910 = vmatmul.mubr.msk.f32.vlgmr.msra.gmra.mrb[2].mxu1 %vm4533_vm8, %v8903_v35  ;;  %v6212_v13 = vpop.permute.xlu1 %6211 }
 0x408   : > { %8912 = vmatpush1.msk.msra.mxu1 %vm4184_vm11, %v5816_v37  ;;  %6047 = vmatprep.mubr.f32.mxu1 %v10065_v36  ;;  %v6662_v60 = vpop.permute.xlu0 %6661  ;;  %v6220_v6 = vsel %vm2037_vm6, %v10377_v28, %v6212_v13  ;;  %v8950_v37 = vld [vmem:[%s10719_s2 + $0xe] sm:$0x3]  ;;  %vm10733_vm6 = vmmov %vm10730_vm0 }
 0x409   : > { %8914 = vmatprep.subr.msk.mxu1 %vm4184_vm11, %v5819_v39 }
 0x40b   : > { %8913 = vmatmul.mubr.msk.f32.vlgmr.msra.gmra.mrb[4].mxu1 %vm4533_vm8, %v8903_v35  ;;  %v6650_v45 = vpop.permute.xlu1 %6649 }
 0x40c   : > { %8915 = vmatpush1.msk.msra.mxu1 %vm4184_vm11, %v5818_v25  ;;  %6118 = vmatprep.mubr.f32.mxu1 %v10065_v36  ;;  %v7112_v7 = vpop.permute.xlu0 %7111  ;;  %v6664_v14 = vsel %vm2455_vm7, %v10390_v33, %v6650_v45 }
 0x40d   : > { %9094 = vmatprep.subr.mxu1 %v10065_v36 }
 0x40f   : > { %8916 = vmatmul.mubr.msk.f32.vlgmr.msra.gmra.mrb[6].mxu1 %vm4533_vm8, %v8903_v35  ;;  %v6652_v43 = vpop.permute.xlu1 %6651 }
 0x410   : > { %9095 = vmatpush3.msk.msra.mxu1 %vm4184_vm11, %v10326_v62  ;;  %9096 = vmatprep.mubr.msk.f32.mxu1 %vm9340_vm3, %v10065_v36  ;;  %v7114_v10 = vpop.permute.xlu0 %7113  ;;  %v6666_v20 = vsel %vm2455_vm7, %v6652_v43, %v10418_v41  ;;  %v6665_v38 = vsel %vm2455_vm7, %v6650_v45, %v6652_v43 }
 0x411   : > { %8919 = vmatprep.subr.msk.mxu1 %vm4184_vm11, %v6214_v44 }
 0x413   : > { %9097 = vmatmul.mubr.msk.f32.vlgmr.msra.gmra.mrb[8].mxu1 %vm4533_vm8, %v8903_v35  ;;  %v6656_v49 = vpop.permute.xlu1 %6655 }
 0x414   : > { %8920 = vmatpush1.msk.msra.mxu1 %vm4184_vm11, %v6213_v48  ;;  %6306 = vmatprep.mubr.f32.mxu1 %v10065_v36  ;;  %v7118_v24 = vpop.permute.xlu0 %7117  ;;  %v6668_v26 = vsel %vm2455_vm7, %v6656_v49, %v10431_v55  ;;  %v6667_v29 = vsel %vm2455_vm7, %v10418_v41, %v6656_v49 }
 0x415   : > { %8922 = vmatprep.subr.msk.mxu1 %vm4184_vm11, %v6216_v51 }
 0x417   : > { %8921 = vmatmul.mubr.msk.f32.vlgmr.msra.gmra.mrb[0].mxu1 %vm4533_vm8, %v8902_v58  ;;  %v6660_v62 = vpop.permute.xlu1 %6659 }
 0x418   : > { %8923 = vmatpush1.msk.msra.mxu1 %vm4184_vm11, %v6215_v59  ;;  %6377 = vmatprep.mubr.f32.mxu1 %v10065_v36  ;;  %v7122_v30 = vpop.permute.xlu0 %7121  ;;  %v6670_v31 = vsel %vm2455_vm7, %v6660_v62, %v6662_v60  ;;  %v6669_v32 = vsel %vm2455_vm7, %v10431_v55, %v6660_v62  ;;  %vm10734_vm7 = vmmov %vm10730_vm0 }
 0x419   : > { %8925 = vmatprep.subr.msk.mxu1 %vm4184_vm11, %v6218_v52  ;;  %v8949_v52 = vld [vmem:[%s10719_s2 + $0xc] sm:$0x3] }
 0x41b   : > { %8924 = vmatmul.mubr.msk.f32.vlgmr.msra.gmra.mrb[2].mxu1 %vm4533_vm8, %v8902_v58  ;;  %v7110_v61 = vpop.permute.xlu1 %7109 }
 0x41c   : > { %8926 = vmatpush1.msk.msra.mxu1 %vm4184_vm11, %v6217_v63  ;;  %6448 = vmatprep.mubr.f32.mxu1 %v10065_v36  ;;  %v7126_v34 = vpop.permute.xlu0 %7125  ;;  %v7128_v35 = vsel %vm10730_vm0, %v7110_v61, %v7112_v7  ;;  %vm10743_vm0 = vmmov %vm10742_vm1 }
 0x41d   : > { %8928 = vmatprep.subr.msk.mxu1 %vm4184_vm11, %v6220_v6 }
 0x41f   : > { %8927 = vmatmul.mubr.msk.f32.vlgmr.msra.gmra.mrb[4].mxu1 %vm4533_vm8, %v8902_v58  ;;  %v7108_v2 = vpop.permute.xlu1 %7107 }
 0x420   : > { %8929 = vmatpush1.msk.msra.mxu1 %vm4184_vm11, %v6219_v8  ;;  %6519 = vmatprep.mubr.f32.mxu1 %v10065_v36  ;;  %v7127_v5 = vsel %vm10731_vm4, %v7108_v2, %v7110_v61  ;;  %v7516_v12 = vpop.permute.xlu0 %7515  ;;  %vm10744_vm4 = vmmov %vm10743_vm0 }
 0x421   : > { %9099 = vmatprep.subr.mxu1 %v10065_v36 }
 0x423   : > { %8930 = vmatmul.mubr.msk.f32.vlgmr.msra.gmra.mrb[6].mxu1 %vm4533_vm8, %v8902_v58  ;;  %v7116_v11 = vpop.permute.xlu1 %7115 }
 0x424   : > { %9100 = vmatpush3.msk.msra.mxu1 %vm4184_vm11, %v6212_v13  ;;  %9101 = vmatprep.mubr.msk.f32.mxu1 %vm9340_vm3, %v10065_v36  ;;  %v7130_v19 = vsel %vm10732_vm5, %v7114_v10, %v7116_v11  ;;  %v7129_v13 = vsel %vm10733_vm6, %v7112_v7, %v7114_v10  ;;  %v7518_v41 = vpop.permute.xlu0 %7517  ;;  %v7131_v45 = vsel %vm10735_vm9, %v7116_v11, %v7118_v24  ;;  %vm10745_vm5 = vmmov %vm10743_vm0  ;;  %vm10748_vm9 = vcmask 474112  }
 0x425   : > { %8935 = vmatprep.subr.msk.mxu1 %vm4184_vm11, %v6664_v14  ;;  %v7533_v61 = vsel %vm10742_vm1, %v7516_v12, %v7518_v41  ;;  %vm10746_vm6 = vmmov %vm10743_vm0 }
 0x427   : > { %9102 = vmatmul.mubr.msk.f32.vlgmr.msra.gmra.mrb[8].mxu1 %vm4533_vm8, %v8902_v58  ;;  %v7120_v18 = vpop.permute.xlu1 %7119 }
 0x428   : > { %8936 = vmatpush1.msk.msra.mxu1 %vm4184_vm11, %v6663_v15  ;;  %6756 = vmatprep.mubr.f32.mxu1 %v10065_v36  ;;  %v7132_v25 = vsel %vm10734_vm7, %v7118_v24, %v7120_v18  ;;  %v7133_v55 = vsel %vm10737_vm12, %v7120_v18, %v7122_v30  ;;  %v7522_v48 = vpop.permute.xlu0 %7521  ;;  %vm10747_vm7 = vmmov %vm10743_vm0 }
 0x429   : > { %8938 = vmatprep.subr.msk.mxu1 %vm4184_vm11, %v6666_v20  ;;  %vm10750_vm12 = vmmov %vm10748_vm9 }
 0x42b   : > { %8937 = vmatmul.mubr.msk.f32.vlgmr.msra.gmra.mrb[0].mxu1 %vm4533_vm8, %v8933_v21  ;;  %v7124_v28 = vpop.permute.xlu1 %7123 }
 0x42c   : > { %8939 = vmatpush1.msk.msra.mxu1 %vm4184_vm11, %v6665_v38  ;;  %6827 = vmatprep.mubr.f32.mxu1 %v10065_v36  ;;  %v7134_v43 = vsel %vm10736_vm10, %v7122_v30, %v7124_v28  ;;  %v7135_v49 = vsel %vm10738_vm13, %v7124_v28, %v7126_v34  ;;  %v7526_v59 = vpop.permute.xlu0 %7525  ;;  %vm10749_vm10 = vmmov %vm10748_vm9  ;;  %v8980_v28 = vld [vmem:[%s10719_s2 + $0x10] sm:$0x3] }
 0x42d   : > { %8941 = vmatprep.subr.msk.mxu1 %vm4184_vm11, %v6668_v26  ;;  %vm10751_vm13 = vmmov %vm10748_vm9 }
 0x42f   : > { %8940 = vmatmul.mubr.msk.f32.vlgmr.msra.gmra.mrb[2].mxu1 %vm4533_vm8, %v8933_v21  ;;  %v7514_v33 = vpop.permute.xlu1 %7513 }
 0x430   : > { %8942 = vmatpush1.msk.msra.mxu1 %vm4184_vm11, %v6667_v29  ;;  %6898 = vmatprep.mubr.f32.mxu1 %v10065_v36  ;;  %v7532_v58 = vsel %vm10739_vm2, %v7514_v33, %v7516_v12  ;;  %v7530_v6 = vpop.permute.xlu0 %7529  ;;  %vm10752_vm2 = vmmov %vm10748_vm9 }
 0x431   : > { %8944 = vmatprep.subr.msk.mxu1 %vm4184_vm11, %v6670_v31  ;;  %vm10755_vm1 = vmmov %vm10752_vm2 }
 0x433   : > { %8943 = vmatmul.mubr.msk.f32.vlgmr.msra.gmra.mrb[4].mxu1 %vm4533_vm8, %v8933_v21  ;;  %v7512_v42 = vpop.permute.xlu1 %7511 }
 0x434   : > { %8945 = vmatpush1.msk.msra.mxu1 %vm4184_vm11, %v6669_v32  ;;  %6969 = vmatprep.mubr.f32.mxu1 %v10065_v36  ;;  %v7970_v11 = vpop.permute.xlu0 %7969 }
 0x435   : > { %9104 = vmatprep.subr.mxu1 %v10065_v36 }
 0x437   : > { %8946 = vmatmul.mubr.msk.f32.vlgmr.msra.gmra.mrb[6].mxu1 %vm4533_vm8, %v8933_v21  ;;  %v7520_v39 = vpop.permute.xlu1 %7519 }
 0x438   : > { %9105 = vmatpush3.msk.msra.mxu1 %vm4184_vm11, %v6662_v60  ;;  %9106 = vmatprep.mubr.msk.f32.mxu1 %vm9340_vm3, %v10065_v36  ;;  %v7531_v60 = vsel %vm10740_vm14, %v7512_v42, %v7514_v33  ;;  %v7534_v62 = vsel %vm10741_vm15, %v7518_v41, %v7520_v39  ;;  %v7535_v8 = vsel %vm10744_vm4, %v7520_v39, %v7522_v48  ;;  %v7972_v20 = vpop.permute.xlu0 %7971  ;;  %vm10753_vm14 = vmmov %vm10752_vm2 }
 0x439   : > { %8952 = vmatprep.subr.msk.mxu1 %vm4184_vm11, %v7128_v35  ;;  %v7987_v30 = vsel %vm10751_vm13, %v7970_v11, %v7972_v20  ;;  %vm10754_vm15 = vmmov %vm10752_vm2 }
 0x43b   : > { %9107 = vmatmul.mubr.msk.f32.vlgmr.msra.gmra.mrb[8].mxu1 %vm4533_vm8, %v8933_v21  ;;  %v7524_v44 = vpop.permute.xlu1 %7523 }
 0x43c   : > { %8953 = vmatpush1.msk.msra.mxu1 %vm4184_vm11, %v7127_v5  ;;  %7221 = vmatprep.mubr.f32.mxu1 %v10065_v36  ;;  %v7536_v7 = vsel %vm10743_vm0, %v7522_v48, %v7524_v44  ;;  %v7537_v14 = vsel %vm10746_vm6, %v7524_v44, %v7526_v59  ;;  %v7976_v29 = vpop.permute.xlu0 %7975  ;;  %vm10756_vm0 = vmmov %vm10755_vm1 }
 0x43d   : > { %8955 = vmatprep.subr.msk.mxu1 %vm4184_vm11, %v7130_v19 }
 0x43f   : > { %8954 = vmatmul.mubr.msk.f32.vlgmr.msra.gmra.mrb[0].mxu1 %vm4533_vm8, %v8950_v37  ;;  %v7528_v51 = vpop.permute.xlu1 %7527 }
 0x440   : > { %8956 = vmatpush1.msk.msra.mxu1 %vm4184_vm11, %v7129_v13  ;;  %7292 = vmatprep.mubr.f32.mxu1 %v10065_v36  ;;  %v7538_v10 = vsel %vm10745_vm5, %v7526_v59, %v7528_v51  ;;  %v7539_v18 = vsel %vm10747_vm7, %v7528_v51, %v7530_v6  ;;  %v7980_v33 = vpop.permute.xlu0 %7979 }
 0x441   : > { %8958 = vmatprep.subr.msk.mxu1 %vm4184_vm11, %v7132_v25 }
 0x443   : > { %8957 = vmatmul.mubr.msk.f32.vlgmr.msra.gmra.mrb[2].mxu1 %vm4533_vm8, %v8950_v37  ;;  %v7968_v63 = vpop.permute.xlu1 %7967 }
 0x444   : > { %8959 = vmatpush1.msk.msra.mxu1 %vm4184_vm11, %v7131_v45  ;;  %7363 = vmatprep.mubr.f32.mxu1 %v10065_v36  ;;  %v7986_v21 = vsel %vm10748_vm9, %v7968_v63, %v7970_v11  ;;  %v7984_v5 = vpop.permute.xlu0 %7983 }
 0x445   : > { %8961 = vmatprep.subr.msk.mxu1 %vm4184_vm11, %v7134_v43 }
 0x447   : > { %8960 = vmatmul.mubr.msk.f32.vlgmr.msra.gmra.mrb[4].mxu1 %vm4533_vm8, %v8950_v37  ;;  %v7966_v2 = vpop.permute.xlu1 %7965 }
 0x448   : > { %8962 = vmatpush1.msk.msra.mxu1 %vm4184_vm11, %v7133_v55  ;;  %7434 = vmatprep.mubr.f32.mxu1 %v10065_v36  ;;  %v7985_v24 = vsel %vm10749_vm10, %v7966_v2, %v7968_v63 }
 0x449   : > { %9109 = vmatprep.subr.mxu1 %v10065_v36 }
 0x44b   : > { %8963 = vmatmul.mubr.msk.f32.vlgmr.msra.gmra.mrb[6].mxu1 %vm4533_vm8, %v8950_v37  ;;  %v7974_v15 = vpop.permute.xlu1 %7973 }
 0x44c   : > { %9110 = vmatpush3.msk.msra.mxu1 %vm4184_vm11, %v7135_v49  ;;  %9111 = vmatprep.mubr.msk.f32.mxu1 %vm9340_vm3, %v10065_v36  ;;  %v7988_v26 = vsel %vm10750_vm12, %v7972_v20, %v7974_v15  ;;  %v7989_v34 = vsel %vm10753_vm14, %v7974_v15, %v7976_v29 }
 0x44d   : > { %8966 = vmatprep.subr.msk.mxu1 %vm4184_vm11, %v7532_v58 }
 0x44f   : > { %9112 = vmatmul.mubr.msk.f32.vlgmr.msra.gmra.mrb[8].mxu1 %vm4533_vm8, %v8950_v37  ;;  %v7978_v38 = vpop.permute.xlu1 %7977 }
 0x450   : > { %8967 = vmatpush1.msk.msra.mxu1 %vm4184_vm11, %v7531_v60  ;;  %7625 = vmatprep.mubr.f32.mxu1 %v10065_v36  ;;  %v7990_v31 = vsel %vm10752_vm2, %v7976_v29, %v7978_v38  ;;  %v7991_v42 = vsel %vm10755_vm1, %v7978_v38, %v7980_v33 }
 0x451   : > { %8969 = vmatprep.subr.msk.mxu1 %vm4184_vm11, %v7534_v62 }
 0x453   : > { %8968 = vmatmul.mubr.msk.f32.vlgmr.msra.gmra.mrb[0].mxu1 %vm4533_vm8, %v8949_v52  ;;  %v7982_v32 = vpop.permute.xlu1 %7981 }
 0x454   : > { %8970 = vmatpush1.msk.msra.mxu1 %vm4184_vm11, %v7533_v61  ;;  %7696 = vmatprep.mubr.f32.mxu1 %v10065_v36  ;;  %v7992_v35 = vsel %vm10754_vm15, %v7980_v33, %v7982_v32  ;;  %v7993_v12 = vsel %vm10756_vm0, %v7982_v32, %v7984_v5  ;;  %v9322_v5 = vld [vmem:[%s10724_s7 + $0x8] ss:$0 sm:$0xff] }
 0x455   : > { %8972 = vmatprep.subr.msk.mxu1 %vm4184_vm11, %v7536_v7 }
 0x457   : > { %8971 = vmatmul.mubr.msk.f32.vlgmr.msra.gmra.mrb[2].mxu1 %vm4533_vm8, %v8949_v52 }
 0x458   : > { %8973 = vmatpush1.msk.msra.mxu1 %vm4184_vm11, %v7535_v8  ;;  %7767 = vmatprep.mubr.f32.mxu1 %v10065_v36 }
 0x459   : > { %8975 = vmatprep.subr.msk.mxu1 %vm4184_vm11, %v7538_v10 }
 0x45b   : > { %8974 = vmatmul.mubr.msk.f32.vlgmr.msra.gmra.mrb[4].mxu1 %vm4533_vm8, %v8949_v52 }
 0x45c   : > { %8976 = vmatpush1.msk.msra.mxu1 %vm4184_vm11, %v7537_v14  ;;  %7838 = vmatprep.mubr.f32.mxu1 %v10065_v36 }
 0x45d   : > { %9114 = vmatprep.subr.mxu1 %v10065_v36 }
 0x45f   : > { %8977 = vmatmul.mubr.msk.f32.vlgmr.msra.gmra.mrb[6].mxu1 %vm4533_vm8, %v8949_v52 }
 0x460   : > { %9115 = vmatpush3.msk.msra.mxu1 %vm4184_vm11, %v7539_v18  ;;  %9116 = vmatprep.mubr.msk.f32.mxu1 %vm9340_vm3, %v10065_v36 }
 0x461   : > { %8982 = vmatprep.subr.msk.mxu1 %vm4184_vm11, %v7986_v21 }
 0x463   : > { %9117 = vmatmul.mubr.msk.f32.vlgmr.msra.gmra.mrb[8].mxu1 %vm4533_vm8, %v8949_v52 }
 0x464   : > { %8983 = vmatpush1.msk.msra.mxu1 %vm4184_vm11, %v7985_v24  ;;  %8079 = vmatprep.mubr.f32.mxu1 %v10065_v36 }
 0x465   : > { %8985 = vmatprep.subr.msk.mxu1 %vm4184_vm11, %v7988_v26 }
 0x467   : > { %8984 = vmatmul.mubr.msk.f32.vlgmr.msra.gmra.mrb[0].mxu1 %vm4533_vm8, %v8980_v28 }
 0x468   : > { %8986 = vmatpush1.msk.msra.mxu1 %vm4184_vm11, %v7987_v30  ;;  %8150 = vmatprep.mubr.f32.mxu1 %v10065_v36 }
 0x469   : > { %8988 = vmatprep.subr.msk.mxu1 %vm4184_vm11, %v7990_v31 }
 0x46b   : > { %8987 = vmatmul.mubr.msk.f32.vlgmr.msra.gmra.mrb[2].mxu1 %vm4533_vm8, %v8980_v28 }
 0x46c   : > { %8989 = vmatpush1.msk.msra.mxu1 %vm4184_vm11, %v7989_v34  ;;  %8221 = vmatprep.mubr.f32.mxu1 %v10065_v36 }
 0x46d   : > { %8991 = vmatprep.subr.msk.mxu1 %vm4184_vm11, %v7992_v35 }
 0x46f   : > { %8990 = vmatmul.mubr.msk.f32.vlgmr.msra.gmra.mrb[4].mxu1 %vm4533_vm8, %v8980_v28 }
 0x470   : > { %8992 = vmatpush1.msk.msra.mxu1 %vm4184_vm11, %v7991_v42  ;;  %8292 = vmatprep.mubr.f32.mxu1 %v10065_v36 }
 0x471   : > { %9119 = vmatprep.subr.mxu1 %v10065_v36 }
 0x473   : > { %8993 = vmatmul.mubr.msk.f32.vlgmr.msra.gmra.mrb[6].mxu1 %vm4533_vm8, %v8980_v28 }
 0x474   : > { %9120 = vmatpush3.msk.msra.mxu1 %vm4184_vm11, %v7993_v12  ;;  %9121 = vmatprep.mubr.msk.f32.mxu1 %vm9340_vm3, %v10065_v36  ;;  %vm10757_vm3 = vcmask 517120  }
 0x477   : > { %9122 = vmatmul.mubr.msk.f32.vlgmr.msra.gmra.mrb[8].mxu1 %vm4533_vm8, %v8980_v28  ;;  %vm10758_vm8 = vmmov %vm10757_vm3 }
 0x53a   : > { %v10609_v19 = vpop.f32.mrb[0].mxu1 }
 0x53b   : > { %v8398_v37 = vmul.f32 %v10609_v19, %v9913_v46  ;;  %v10613_v13 = vpop.f32.mrb[1].mxu1 }
 0x53c   : > { %v8399_v39 = vmul.f32 %v10613_v13, %v9916_v47 }
 0x53d   : > { %v8407_v25 = vsel %vm4184_vm11, %v8398_v37, 0.0  ;;  %v8426_v41 = vmul.f32 %v8398_v37, %v8398_v37 }
 0x53e   : > { %v8408_v45 = vsel %vm4184_vm11, %v8399_v39, 0.0  ;;  %v8427_v43 = vmul.f32 %v8399_v39, %v8399_v39  ;;  %v10619_v44 = vpop.f32.mrb[2].mxu1 }
 0x53f   : > { %v8435_v36 = vsel %vm4184_vm11, %v8426_v41, 0.0  ;;  %v8409_v55 = vadd.f32 %v8408_v45, %v8407_v25  ;;  %v8400_v48 = vmul.f32 %v10619_v44, %v9927_v54  ;;  %v10624_v46 = vpop.f32.mrb[3].mxu1 }
 0x540   : > { %v8436_v49 = vsel %vm4184_vm11, %v8427_v43, 0.0  ;;  %v8401_v47 = vmul.f32 %v10624_v46, %v9931_v56 }
 0x541   : > { %v8437_v51 = vadd.f32 %v8436_v49, %v8435_v36  ;;  %v8410_v58 = vsel %vm4184_vm11, %v8400_v48, 0.0  ;;  %v8428_v59 = vmul.f32 %v8400_v48, %v8400_v48  ;;  %v8397_v49 = vld [vmem:[%s368_s14] sm:$0x3] }
 0x542   : > { %v8411_v60 = vadd.f32 %v8410_v58, %v8409_v55  ;;  %v8412_v62 = vsel %vm4184_vm11, %v8401_v47, 0.0  ;;  %v8429_v52 = vmul.f32 %v8401_v47, %v8401_v47  ;;  %v10631_v63 = vpop.f32.mrb[4].mxu1  ;;  %v8396_v47 = vld [vmem:[%s364_s17] sm:$0x3]  ;;  %v4333_v58 = vpop.xlane.xlu1 %4332 }
 0x543   : > { %v8438_v61 = vsel %vm4184_vm11, %v8428_v59, 0.0  ;;  %v8402_v54 = vmul.f32 %v10631_v63, %v9933_v57  ;;  %v10636_v6 = vpop.f32.mrb[5].mxu1 }
 0x544   : > { %v8439_v7 = vadd.f32 %v8438_v61, %v8437_v51  ;;  %v8413_v8 = vadd.f32 %v8412_v62, %v8411_v60  ;;  %v8440_v56 = vsel %vm4184_vm11, %v8429_v52, 0.0  ;;  %v8403_v2 = vmul.f32 %v10636_v6, %v9943_v4  ;;  %v4314_v51 = vpop.xlane.xlu0 %4313 }
 0x545   : > { %v8414_v10 = vsel %vm4184_vm11, %v8402_v54, 0.0  ;;  %v8430_v11 = vmul.f32 %v8402_v54, %v8402_v54  ;;  %v4334_v59 = vmul.f32 0.0009765625, %v4314_v51  ;;  %v4335_v60 = vmul.f32 0.0009765625, %v4333_v58 }
 0x546   : > { %v8441_v14 = vadd.f32 %v8440_v56, %v8439_v7  ;;  %v8415_v15 = vadd.f32 %v8414_v10, %v8413_v8  ;;  %v8416_v18 = vsel %vm4184_vm11, %v8403_v2, 0.0  ;;  %v8431_v20 = vmul.f32 %v8403_v2, %v8403_v2  ;;  %v10643_v21 = vpop.f32.mrb[6].mxu1 }
 0x547   : > { %v8442_v57 = vsel %vm4184_vm11, %v8430_v11, 0.0  ;;  %v8404_v24 = vmul.f32 %v10643_v21, %v9955_v16  ;;  %v10648_v38 = vpop.f32.mrb[7].mxu1  ;;  %v4336_v62 = vmul.f32 %v4334_v59, %v4334_v59  ;;  %v4338_v11 = vsub.f32 %v9920_v50, %v4334_v59 }
 0x548   : > { %v8443_v26 = vadd.f32 %v8442_v57, %v8441_v14  ;;  %v8417_v28 = vadd.f32 %v8416_v18, %v8415_v15  ;;  %v8444_v4 = vsel %vm4184_vm11, %v8431_v20, 0.0  ;;  %v8405_v29 = vmul.f32 %v10648_v38, %v9957_v17 }
 0x549   : > { %v8418_v30 = vsel %vm4184_vm11, %v8404_v24, 0.0  ;;  %v8432_v31 = vmul.f32 %v8404_v24, %v8404_v24  ;;  %v4337_v52 = vsub.f32 %v4335_v60, %v4336_v62  ;;  %v4339_v15 = vsub.f32 %v9925_v53, %v4334_v59 }
 0x54a   : > { %v8445_v32 = vadd.f32 %v8444_v4, %v8443_v26  ;;  %v8419_v33 = vadd.f32 %v8418_v30, %v8417_v28  ;;  %v8420_v34 = vsel %vm4184_vm11, %v8405_v29, 0.0  ;;  %v8433_v35 = vmul.f32 %v8405_v29, %v8405_v29  ;;  %v10655_v42 = vpop.f32.mrb[8].mxu1 }
 0x54b   : > { %v8446_v16 = vsel %vm4184_vm11, %v8432_v31, 0.0  ;;  %v8406_v12 = vmul.f32 %v9322_v5, %v10655_v42  ;;  %v9123_v17 = vpop.f32.mrb[9].mxu1  ;;  %v4347_v61 = vadd.f32 1e-05, %v4337_v52  ;;  %v4340_v18 = vsub.f32 %v9941_v3, %v4334_v59 }
 0x54c   : > { %v8447_v37 = vadd.f32 %v8446_v16, %v8445_v32  ;;  %v8421_v39 = vadd.f32 %v8420_v34, %v8419_v33  ;;  %v8448_v25 = vsel %vm4184_vm11, %v8433_v35, 0.0  ;;  %v4341_v20 = vsub.f32 %v9947_v9, %v4334_v59  ;;  %vm10759_vm11 = vmmov %vm10757_vm3 }
 0x54d   : > { %v8422_v41 = vsel %vm10757_vm3, %v8406_v12, 0.0  ;;  %v8434_v45 = vmul.f32 %v8406_v12, %v8406_v12  ;;  %9317 = vrsqrt.f32 %v4347_v61  ;;  %v4342_v57 = vsub.f32 %v9962_v22, %v4334_v59 }
 0x54e   : > { %v8423_v43 = vadd.f32 %v8422_v41, %v8421_v39  ;;  %v8449_v36 = vadd.f32 %v8448_v25, %v8447_v37  ;;  %v4343_v24 = vsub.f32 %v9965_v27, %v4334_v59  ;;  %v4344_v26 = vsub.f32 %v9976_v40, %v4334_v59 }
 0x54f   : > { %v8450_v55 = vsel %vm10758_vm8, %v8434_v45, 0.0  ;;  %v4345_v28 = vsub.f32 %v9979_v0, %v4334_v59  ;;  %v4346_v29 = vsub.f32 %v9994_v1, %v4334_v59 }
 0x550   : > { %8424 = vadd.xlane.f32.xlu1 %v8423_v43  ;;  %v8451_v48 = vadd.f32 %v8450_v55, %v8449_v36 }
 0x552   : > { %8452 = vadd.xlane.f32.xlu0 %v8451_v48 }
 0x557   : > { %v9318_v10 = vpop.eup %9317 }
 0x558   : > { %v4349_v30 = vmul.f32 %v9318_v10, %v4338_v11  ;;  %v4350_v50 = vmul.f32 %v9318_v10, %v4339_v15  ;;  %v4351_v31 = vmul.f32 %v9318_v10, %v4340_v18  ;;  %v4352_v32 = vmul.f32 %v9318_v10, %v4341_v20 }
 0x559   : > { %v4353_v53 = vmul.f32 %v9318_v10, %v4342_v57  ;;  %v4354_v33 = vmul.f32 %v9318_v10, %v4343_v24  ;;  %v4355_v3 = vmul.f32 %v9318_v10, %v4344_v26  ;;  %v4356_v9 = vmul.f32 %v9318_v10, %v4345_v28 }
 0x55a   : > { %v4357_v34 = vmul.f32 %v9318_v10, %v4346_v29  ;;  %v4358_v22 = vmax.f32 %v4349_v30, 0.0  ;;  %v4359_v35 = vmax.f32 %v4350_v50, 0.0  ;;  %v4360_v27 = vmax.f32 %v4351_v31, 0.0 }
 0x55b   : > { %v4361_v16 = vmax.f32 %v4352_v32, 0.0  ;;  %v4362_v40 = vmax.f32 %v4353_v53, 0.0  ;;  %v4363_v5 = vmax.f32 %v4354_v33, 0.0  ;;  %v4364_v0 = vmax.f32 %v4355_v3, 0.0 }
 0x55c   : > { %v4365_v12 = vmax.f32 %v4356_v9, 0.0  ;;  %v4366_v17 = vmax.f32 %v4357_v34, 0.0  ;;  %v8524_v1 = vrot.slane %v4358_v22, 2  ;;  %v8525_v37 = vrot.slane %v4359_v35, 2 }
 0x55d   : > { %v8526_v39 = vrot.slane %v4360_v27, 2  ;;  %v8527_v25 = vrot.slane %v4361_v16, 2  ;;  %v8528_v41 = vrot.slane %v4362_v40, 2  ;;  %v8529_v45 = vrot.slane %v4363_v5, 2 }
 0x55e   : > { %v8530_v36 = vrot.slane %v4364_v0, 2  ;;  %v8531_v55 = vrot.slane %v4365_v12, 2  ;;  %v8532_v48 = vrot.slane %v4366_v17, 2 }
 0x561   : > { %8494 = vperm.xlu1 %9308, %v8397_v49  }
 0x568   : > { %8480 = vperm.xlu0 %9307, %v8396_v47  }
 0x5dd   : > { %v8425_v54 = vpop.xlane.xlu1 %8424 }
 0x5de   : > { %v10673_v7 = vmul.f32 0.0009765625, %v8425_v54 }
 0x5df   : > { %v8453_v8 = vpop.xlane.xlu0 %8452 }
 0x5e0   : > { %v8455_v56 = vmul.f32 0.0009765625, %v8453_v8  ;;  %v8456_v2 = vmul.f32 %v10673_v7, %v10673_v7  ;;  %v8458_v43 = vsub.f32 %v10609_v19, %v10673_v7  ;;  %v8459_v49 = vsub.f32 %v10613_v13, %v10673_v7 }
 0x5e1   : > { %v8460_v47 = vsub.f32 %v10619_v44, %v10673_v7  ;;  %v8461_v51 = vsub.f32 %v10624_v46, %v10673_v7  ;;  %v8462_v58 = vsub.f32 %v10631_v63, %v10673_v7  ;;  %v8463_v60 = vsub.f32 %v10636_v6, %v10673_v7 }
 0x5e2   : > { %v8457_v14 = vsub.f32 %v8455_v56, %v8456_v2  ;;  %v8464_v19 = vsub.f32 %v10643_v21, %v10673_v7  ;;  %v8465_v62 = vsub.f32 %v10648_v38, %v10673_v7  ;;  %v8466_v13 = vsub.f32 %v10655_v42, %v10673_v7  ;;  %v8495_v21 = vpop.permute.xlu1 %8494 }
 0x5e4   : > { %v8467_v4 = vadd.f32 1e-05, %v8457_v14 }
 0x5e6   : > { %9319 = vrsqrt.f32 %v8467_v4 }
 0x5e7   : > { %v8481_v54 = vpop.permute.xlu0 %8480 }
 0x5f0   : > { %v9320_v59 = vpop.eup %9319 }
 0x5f1   : > { %v8469_v44 = vmul.f32 %v9320_v59, %v8458_v43  ;;  %v8470_v52 = vmul.f32 %v9320_v59, %v8459_v49  ;;  %v8471_v61 = vmul.f32 %v9320_v59, %v8460_v47  ;;  %v8472_v46 = vmul.f32 %v9320_v59, %v8461_v51 }
 0x5f2   : > { %v8473_v8 = vmul.f32 %v9320_v59, %v8462_v58  ;;  %v8474_v63 = vmul.f32 %v9320_v59, %v8463_v60  ;;  %v8475_v56 = vmul.f32 %v9320_v59, %v8464_v19  ;;  %v8476_v2 = vmul.f32 %v9320_v59, %v8465_v62 }
 0x5f3   : > { %v8477_v10 = vmul.f32 %v9320_v59, %v8466_v13  ;;  %v8483_v6 = vmul.f32 %v8481_v54, %v8469_v44  ;;  %v8484_v11 = vmul.f32 %v8481_v54, %v8470_v52  ;;  %v8485_v14 = vmul.f32 %v8481_v54, %v8471_v61 }
 0x5f4   : > { %v8486_v15 = vmul.f32 %v8481_v54, %v8472_v46  ;;  %v8487_v18 = vmul.f32 %v8481_v54, %v8473_v8  ;;  %v8488_v38 = vmul.f32 %v8481_v54, %v8474_v63  ;;  %v8489_v20 = vmul.f32 %v8481_v54, %v8475_v56 }
 0x5f5   : > { %v8490_v57 = vmul.f32 %v8481_v54, %v8476_v2  ;;  %v8491_v42 = vmul.f32 %v8481_v54, %v8477_v10  ;;  %v8497_v7 = vadd.f32 %v8495_v21, %v8483_v6  ;;  %v8498_v24 = vadd.f32 %v8495_v21, %v8484_v11 }
 0x5f6   : > { %v8499_v26 = vadd.f32 %v8495_v21, %v8485_v14  ;;  %v8500_v28 = vadd.f32 %v8495_v21, %v8486_v15  ;;  %v8501_v4 = vadd.f32 %v8495_v21, %v8487_v18  ;;  %v8502_v29 = vadd.f32 %v8495_v21, %v8488_v38 }
 0x5f7   : > { %v8503_v30 = vadd.f32 %v8495_v21, %v8489_v20  ;;  %v8504_v50 = vadd.f32 %v8495_v21, %v8490_v57  ;;  %v8505_v31 = vadd.f32 %v8495_v21, %v8491_v42  ;;  %v8506_v32 = vmax.f32 %v8497_v7, 0.0 }
 0x5f8   : > { %v8507_v53 = vmax.f32 %v8498_v24, 0.0  ;;  %v8508_v33 = vmax.f32 %v8499_v26, 0.0  ;;  %v8509_v3 = vmax.f32 %v8500_v28, 0.0  ;;  %v8510_v9 = vmax.f32 %v8501_v4, 0.0 }
 0x5f9   : > { %v8511_v34 = vmax.f32 %v8502_v29, 0.0  ;;  %v8512_v22 = vmax.f32 %v8503_v30, 0.0  ;;  %v8513_v35 = vmax.f32 %v8504_v50, 0.0  ;;  %v8514_v27 = vmax.f32 %v8505_v31, 0.0 }
 0x5fa   : > { %v8542_v16 = vadd.f32 %v8524_v1, %v8506_v32  ;;  %v8543_v40 = vadd.f32 %v8525_v37, %v8507_v53  ;;  %v8544_v5 = vadd.f32 %v8526_v39, %v8508_v33  ;;  %v8545_v0 = vadd.f32 %v8527_v25, %v8509_v3 }
 0x5fb   : > { %v8546_v12 = vadd.f32 %v8528_v41, %v8510_v9  ;;  %v8547_v17 = vadd.f32 %v8529_v45, %v8511_v34  ;;  %v8548_v43 = vadd.f32 %v8530_v36, %v8512_v22  ;;  %v8549_v49 = vadd.f32 %v8531_v55, %v8513_v35 }
 0x5fc   : > { %v8550_v47 = vadd.f32 %v8532_v48, %v8514_v27  ;;  %v8560_v51 = vcombine.low %v8542_v16, %v8543_v40  ;;  %v8561_v58 = vcombine.low %v8544_v5, %v8545_v0 }
 0x5fd   : > { %v8577_v59 = vcombine.low %v8546_v12, %v8547_v17  ;;  %v8578_v60 = vcombine.low %v8548_v43, %v8549_v49 }
 0x5fe   : > { %v8568_v19 = vrot.slane %v8560_v51, %v10058_v23  ;;  %v8575_v1 = vrot.slane %v8561_v58, %v10058_v23  ;;  %v8600_v37 = vrot.slane %v8550_v47, %v10058_v23 }
 0x5ff   : > { %v8585_v39 = vrot.slane %v8577_v59, %v10058_v23  ;;  %v8592_v25 = vrot.slane %v8578_v60, %v10058_v23 }
 0x600   : > { %v8576_v41 = vcombine.low %v8568_v19, %v8575_v1  ;;  %8606 = vst.msk [vmem:[%s373_s26 + $0x10] sm:$0x3] %vm10759_vm11, %v8600_v37 }
 0x601   : > { %v8593_v45 = vcombine.low %v8585_v39, %v8592_v25 }
 0x602   : > { %8604 = vst [vmem:[%s373_s26] sm:$0xff] %v8576_v41 }
 0x603   : > { %8605 = vst [vmem:[%s373_s26 + $0x8] sm:$0xff] %v8593_v45 }
 0x604 PF: > { %s18_s27 = sadd.s32 1, %s9329_s27  }
 0x605   : > { %p15_p4 = scmp.ge.s32.totalorder %s18_s27, 4  }
 0x607   :  { %17 = sbr.rel (!%p15_p4) target bundleno = 1 (0x1), region = 110 }

</bundles_post_ra>
